<compile_context>
chip_gen: v7x
topology: tpu7x:2x2x1
jax: 0.10.0
libtpu: 0.0.40
codegen_flags: <defaults>
</compile_context>

<pallas_src>
import functools

import jax
import jax.numpy as jnp
from jax.experimental import pallas as pl
from jax.experimental.pallas import tpu as pltpu

INPUT_SIZE = 28
HIDDEN_SIZE = 32
LAYERS = 2
NUM_CLASSES = 10
HEAD_PAD = 128  # lane-dense padded head width


# ----------------------------------------------------------------------------
# Fused Pallas kernel: [LSTM x LAYERS] + Linear head, all resident in VMEM.
# ----------------------------------------------------------------------------
def _fused_lstm_kernel(x_ref, *refs, n_layers, T, B, H):
    """Argument order (via pallas_call):
      x_ref               : (B, T, D) batch-first input, f32
      refs[3l .. 3l+2]    : layer l: W_ih (D_in,4H) bf16, W_hh (H,4H) bf16, b (1,4H) f32
      refs[3L], refs[3L+1]: head W (H,HEAD_PAD) bf16, head b (1,HEAD_PAD) f32
      refs[3L+2]          : out_ref (B, T, HEAD_PAD) f32

    i/f/o gate columns of W_ih/W_hh/b are pre-scaled by 0.5 (see
    prepare_kernel_params), so one tanh per step serves both tanh(g) and
    sigmoid(i/f/o) = 0.5*tanh(z/2) + 0.5.  Gate order is PyTorch's [i,f,g,o].
    """
    layer_refs = refs[:3 * n_layers]
    w_out_ref, b_out_ref, out_ref = refs[3 * n_layers:]

    w_ih = [layer_refs[3 * l][...] for l in range(n_layers)]       # bf16
    w_hh = [layer_refs[3 * l + 1][...] for l in range(n_layers)]   # bf16
    bias = [layer_refs[3 * l + 2][...] for l in range(n_layers)]   # f32 (1,4H)

    # Hoisted layer-0 input projection: one MXU pass over all timesteps,
    # bias folded in once.  (B,T,D) -> (B*T,D) is a tile-exact reshape (f32,
    # sublane=8=T), so no relayout copy.
    D = x_ref.shape[-1]
    x2 = x_ref[...].reshape(B * T, D).astype(jnp.bfloat16)
    pre0 = jnp.dot(x2, w_ih[0], preferred_element_type=jnp.float32)
    pre0 = (pre0 + bias[0]).reshape(B, T, 4 * H)                    # f32

    # Hoist all broadcasts out of the unrolled loop (JAX does not CSE them).
    bias_b = [jnp.broadcast_to(bias[l], (B, 4 * H)) for l in range(n_layers)]
    w_out = w_out_ref[...]                                          # bf16
    b_out_b = jnp.broadcast_to(b_out_ref[...], (B, w_out.shape[1]))  # f32

    # h kept in bf16 (only ever consumed by MXU matmuls); c kept in f32.
    h = [jnp.zeros((B, H), jnp.bfloat16) for _ in range(n_layers)]
    c = [jnp.zeros((B, H), jnp.float32) for _ in range(n_layers)]

    # Wavefront recurrence, fully unrolled (T, LAYERS are small & static).
    for t in range(T):
        for l in range(n_layers):
            if l == 0:
                g_in = pre0[:, t, :]                                # bias included
            else:
                # Per-step input projection => layer l step t only depends on
                # layer l-1 step t (enables cross-layer overlap).
                g_in = jnp.dot(h[l - 1], w_ih[l],
                               preferred_element_type=jnp.float32) + bias_b[l]
            gates = g_in + jnp.dot(h[l], w_hh[l],
                                   preferred_element_type=jnp.float32)  # (B,4H) f32
            # Single EUP pass over all 4H gate lanes.
            tg = jnp.tanh(gates)
            sg = 0.5 * tg + 0.5          # sigmoid for the 0.5-prescaled i/f/o lanes
            i_g = sg[:, 0 * H:1 * H]
            f_g = sg[:, 1 * H:2 * H]
            g_g = tg[:, 2 * H:3 * H]
            o_g = sg[:, 3 * H:4 * H]
            c[l] = f_g * c[l] + i_g * g_g
            h[l] = (o_g * jnp.tanh(c[l])).astype(jnp.bfloat16)

        # Head for timestep t (off the recurrence chain): lane-dense store.
        out_t = jnp.dot(h[n_layers - 1], w_out,
                        preferred_element_type=jnp.float32) + b_out_b
        out_ref[:, t, :] = out_t.astype(out_ref.dtype)


def fused_lstm_pallas(x, kernel_lstm_params, kernel_head_params, *, T, B):
    """x: (B, T, INPUT_SIZE) f32, batch-first.  Returns (B, T, HEAD_PAD) f32."""
    H = HIDDEN_SIZE
    n_layers = len(kernel_lstm_params)
    w_out, b_out = kernel_head_params
    Cp = w_out.shape[1]

    args = [x]
    in_specs = [pl.BlockSpec(x.shape, lambda i: (0, 0, 0))]
    for (w_ih, w_hh, b) in kernel_lstm_params:
        args += [w_ih, w_hh, b]
        in_specs += [
            pl.BlockSpec(w_ih.shape, lambda i: (0, 0)),
            pl.BlockSpec(w_hh.shape, lambda i: (0, 0)),
            pl.BlockSpec(b.shape, lambda i: (0, 0)),
        ]
    args += [w_out, b_out]
    in_specs += [
        pl.BlockSpec(w_out.shape, lambda i: (0, 0)),
        pl.BlockSpec(b_out.shape, lambda i: (0, 0)),
    ]

    kernel = functools.partial(_fused_lstm_kernel,
                               n_layers=n_layers, T=T, B=B, H=H)
    return pl.pallas_call(
        kernel,
        out_shape=jax.ShapeDtypeStruct((B, T, Cp), jnp.float32),
        grid_spec=pltpu.PrefetchScalarGridSpec(
            num_scalar_prefetch=0,
            grid=(1,),
            in_specs=in_specs,
            out_specs=pl.BlockSpec((B, T, Cp), lambda i: (0, 0, 0)),
        ),
        compiler_params=pltpu.CompilerParams(
            dimension_semantics=("arbitrary",)),
    )(*args)


# ----------------------------------------------------------------------------
# Parameters & wrappers
# ----------------------------------------------------------------------------
def init_params(key):
    """Deterministic synthetic parameters matching nn.LSTM / nn.Linear shapes.

    Stored pre-transposed: W_ih (D_in, 4H), W_hh (H, 4H), combined bias (1, 4H);
    linear W (H, 10), b (1, 10).  Gate order follows PyTorch: [i, f, g, o].
    """
    params = []
    d_in = INPUT_SIZE
    for _ in range(LAYERS):
        key, k1, k2, k3, k4 = jax.random.split(key, 5)
        scale = 1.0 / jnp.sqrt(HIDDEN_SIZE)
        w_ih = jax.random.uniform(k1, (d_in, 4 * HIDDEN_SIZE), jnp.float32,
                                  -scale, scale)
        w_hh = jax.random.uniform(k2, (HIDDEN_SIZE, 4 * HIDDEN_SIZE),
                                  jnp.float32, -scale, scale)
        b_ih = jax.random.uniform(k3, (4 * HIDDEN_SIZE,), jnp.float32,
                                  -scale, scale)
        b_hh = jax.random.uniform(k4, (4 * HIDDEN_SIZE,), jnp.float32,
                                  -scale, scale)
        params.append((w_ih, w_hh, (b_ih + b_hh)[None, :]))
        d_in = HIDDEN_SIZE
    key, k1, k2 = jax.random.split(key, 3)
    scale = 1.0 / jnp.sqrt(HIDDEN_SIZE)
    w_out = jax.random.uniform(k1, (HIDDEN_SIZE, NUM_CLASSES), jnp.float32,
                               -scale, scale)
    b_out = jax.random.uniform(k2, (NUM_CLASSES,), jnp.float32,
                               -scale, scale)[None, :]
    return params, (w_out, b_out)


def prepare_kernel_params(lstm_params, head_params):
    """One-time (init) transform of the canonical parameters for the kernel:
      * i/f/o gate columns of W_ih / W_hh / bias scaled by 0.5 (exact) so the
        kernel uses one tanh per step instead of tanh + sigmoid,
      * matmul weights cast to bf16 (MXU-native on v5e/v6e/v7x),
      * head W/b zero-padded to 128 lanes for a lane-dense output store.
    """
    H = HIDDEN_SIZE
    gate_scale = jnp.concatenate([
        jnp.full((H,), 0.5, jnp.float32),   # i
        jnp.full((H,), 0.5, jnp.float32),   # f
        jnp.ones((H,), jnp.float32),        # g (stays tanh)
        jnp.full((H,), 0.5, jnp.float32),   # o
    ])
    kparams = []
    for (w_ih, w_hh, b) in lstm_params:
        kparams.append((
            (w_ih * gate_scale).astype(jnp.bfloat16),
            (w_hh * gate_scale).astype(jnp.bfloat16),
            (b * gate_scale).astype(jnp.float32),
        ))
    w_out, b_out = head_params
    C = w_out.shape[1]
    w_out_p = jnp.zeros((H, HEAD_PAD), jnp.float32).at[:, :C].set(w_out)
    b_out_p = jnp.zeros((1, HEAD_PAD), jnp.float32).at[:, :C].set(b_out)
    return kparams, (w_out_p.astype(jnp.bfloat16), b_out_p)


@jax.jit
def lstm_forward(x, kernel_lstm_params, kernel_head_params):
    """x: (B, T, INPUT_SIZE) batch_first, like the PyTorch module."""
    B, T, _ = x.shape
    out_pad = fused_lstm_pallas(x.astype(jnp.float32),
                                kernel_lstm_params, kernel_head_params,
                                T=T, B=B)
    return out_pad[..., :NUM_CLASSES]


def _reference_forward(x, lstm_params, head_params):
    """Pure-JAX f32 reference (lax.scan) matching PyTorch eval() semantics."""
    h_seq = jnp.transpose(x, (1, 0, 2)).astype(jnp.float32)
    B = x.shape[0]
    for (w_ih, w_hh, b) in lstm_params:
        H = w_hh.shape[0]

        def step(carry, x_t):
            h, c = carry
            gates = x_t @ w_ih + h @ w_hh + b
            i = jax.nn.sigmoid(gates[:, 0 * H:1 * H])
            f = jax.nn.sigmoid(gates[:, 1 * H:2 * H])
            g = jnp.tanh(gates[:, 2 * H:3 * H])
            o = jax.nn.sigmoid(gates[:, 3 * H:4 * H])
            c = f * c + i * g
            h = o * jnp.tanh(c)
            return (h, c), h

        init = (jnp.zeros((B, H), jnp.float32), jnp.zeros((B, H), jnp.float32))
        _, h_seq = jax.lax.scan(step, init, h_seq)
    r_out = jnp.transpose(h_seq, (1, 0, 2))
    w_out, b_out = head_params
    return r_out @ w_out + b_out


if __name__ == "__main__":
    key = jax.random.PRNGKey(0)
    key, kx, kp = jax.random.split(key, 3)

    B, T = 2, 8
    x = jax.random.normal(kx, (B, T, INPUT_SIZE), jnp.float32)
    lstm_params, head_params = init_params(kp)
    k_lstm, k_head = prepare_kernel_params(lstm_params, head_params)

    out = lstm_forward(x, k_lstm, k_head)
    out = jax.block_until_ready(out)
    assert out.shape == (B, T, NUM_CLASSES), out.shape

    ref = _reference_forward(x, lstm_params, head_params)
    # bf16 MXU operands through a 2-layer, 8-step recurrence => relaxed tol.
    assert jnp.allclose(out, ref, atol=3e-2, rtol=3e-2), (
        "mismatch vs reference, max abs err = "
        f"{float(jnp.max(jnp.abs(out - ref)))}")

    print("KERNEL_OK")
</pallas_src>

<mosaic_0001>
module attributes {stable_mosaic.version = 11 : i64} {
  func.func @_fused_lstm_kernel(%arg0: i32, %arg1: memref<2x8x28xf32, #tpu.memory_space<vmem>>, %arg2: memref<28x128xbf16, #tpu.memory_space<vmem>>, %arg3: memref<32x128xbf16, #tpu.memory_space<vmem>>, %arg4: memref<1x128xf32, #tpu.memory_space<vmem>>, %arg5: memref<32x128xbf16, #tpu.memory_space<vmem>>, %arg6: memref<32x128xbf16, #tpu.memory_space<vmem>>, %arg7: memref<1x128xf32, #tpu.memory_space<vmem>>, %arg8: memref<32x128xbf16, #tpu.memory_space<vmem>>, %arg9: memref<1x128xf32, #tpu.memory_space<vmem>>, %arg10: memref<2x8x128xf32, #tpu.memory_space<vmem>>) attributes {dimension_semantics = [#tpu.dimension_semantics<arbitrary>], iteration_bounds = array<i64: 1>, scalar_prefetch = 0 : i64, scratch_operands = 0 : i64, tpu.core_type = #tpu.core_type<tc>, window_params = [{pipeline_mode = #tpu.pipeline_mode<synchronous>, transform_indices = @transform_0, window_bounds = array<i64: 2, 8, 28>}, {pipeline_mode = #tpu.pipeline_mode<synchronous>, transform_indices = @transform_1, window_bounds = array<i64: 28, 128>}, {pipeline_mode = #tpu.pipeline_mode<synchronous>, transform_indices = @transform_2, window_bounds = array<i64: 32, 128>}, {pipeline_mode = #tpu.pipeline_mode<synchronous>, transform_indices = @transform_3, window_bounds = array<i64: 1, 128>}, {pipeline_mode = #tpu.pipeline_mode<synchronous>, transform_indices = @transform_4, window_bounds = array<i64: 32, 128>}, {pipeline_mode = #tpu.pipeline_mode<synchronous>, transform_indices = @transform_5, window_bounds = array<i64: 32, 128>}, {pipeline_mode = #tpu.pipeline_mode<synchronous>, transform_indices = @transform_6, window_bounds = array<i64: 1, 128>}, {pipeline_mode = #tpu.pipeline_mode<synchronous>, transform_indices = @transform_7, window_bounds = array<i64: 32, 128>}, {pipeline_mode = #tpu.pipeline_mode<synchronous>, transform_indices = @transform_8, window_bounds = array<i64: 1, 128>}, {pipeline_mode = #tpu.pipeline_mode<synchronous>, transform_indices = @transform_9, window_bounds = array<i64: 2, 8, 128>}]} {
    %c0 = arith.constant 0 : index
    %c0_0 = arith.constant 0 : index
    %0 = vector.load %arg2[%c0, %c0_0] : memref<28x128xbf16, #tpu.memory_space<vmem>>, vector<28x128xbf16>
    %c0_1 = arith.constant 0 : index
    %c0_2 = arith.constant 0 : index
    %1 = vector.load %arg5[%c0_1, %c0_2] : memref<32x128xbf16, #tpu.memory_space<vmem>>, vector<32x128xbf16>
    %c0_3 = arith.constant 0 : index
    %c0_4 = arith.constant 0 : index
    %2 = vector.load %arg3[%c0_3, %c0_4] : memref<32x128xbf16, #tpu.memory_space<vmem>>, vector<32x128xbf16>
    %c0_5 = arith.constant 0 : index
    %c0_6 = arith.constant 0 : index
    %3 = vector.load %arg6[%c0_5, %c0_6] : memref<32x128xbf16, #tpu.memory_space<vmem>>, vector<32x128xbf16>
    %c0_7 = arith.constant 0 : index
    %c0_8 = arith.constant 0 : index
    %4 = vector.load %arg4[%c0_7, %c0_8] : memref<1x128xf32, #tpu.memory_space<vmem>>, vector<1x128xf32>
    %c0_9 = arith.constant 0 : index
    %c0_10 = arith.constant 0 : index
    %5 = vector.load %arg7[%c0_9, %c0_10] : memref<1x128xf32, #tpu.memory_space<vmem>>, vector<1x128xf32>
    %c0_11 = arith.constant 0 : index
    %c0_12 = arith.constant 0 : index
    %c0_13 = arith.constant 0 : index
    %6 = vector.load %arg1[%c0_11, %c0_12, %c0_13] : memref<2x8x28xf32, #tpu.memory_space<vmem>>, vector<2x8x28xf32>
    %7 = vector.shape_cast %6 : vector<2x8x28xf32> to vector<16x28xf32>
    %8 = arith.truncf %7 : vector<16x28xf32> to vector<16x28xbf16>
    %cst = arith.constant dense<0.000000e+00> : vector<16x128xf32>
    %9 = tpu.matmul %8, %0, %cst {dimension_numbers = #tpu.dot_dimension_numbers<[1], [0], [0], [1], [0, 0, 1, 1], [], []>} : vector<16x28xbf16>, vector<28x128xbf16>, vector<16x128xf32> -> vector<16x128xf32>
    %10 = vector.broadcast %4 : vector<1x128xf32> to vector<16x128xf32>
    %11 = arith.addf %9, %10 : vector<16x128xf32>
    %12 = vector.shape_cast %11 : vector<16x128xf32> to vector<2x8x128xf32>
    %13 = vector.shape_cast %5 : vector<1x128xf32> to vector<1x128xf32>
    %14 = vector.broadcast %13 : vector<1x128xf32> to vector<2x128xf32>
    %c0_14 = arith.constant 0 : index
    %c0_15 = arith.constant 0 : index
    %15 = vector.load %arg8[%c0_14, %c0_15] : memref<32x128xbf16, #tpu.memory_space<vmem>>, vector<32x128xbf16>
    %c0_16 = arith.constant 0 : index
    %c0_17 = arith.constant 0 : index
    %16 = vector.load %arg9[%c0_16, %c0_17] : memref<1x128xf32, #tpu.memory_space<vmem>>, vector<1x128xf32>
    %17 = vector.shape_cast %16 : vector<1x128xf32> to vector<1x128xf32>
    %18 = vector.broadcast %17 : vector<1x128xf32> to vector<2x128xf32>
    %cst_18 = arith.constant 0.000000e+00 : bf16
    %19 = vector.broadcast %cst_18 : bf16 to vector<2x32xbf16>
    %cst_19 = arith.constant 0.000000e+00 : bf16
    %20 = vector.broadcast %cst_19 : bf16 to vector<2x32xbf16>
    %cst_20 = arith.constant 0.000000e+00 : f32
    %21 = vector.broadcast %cst_20 : f32 to vector<2x32xf32>
    %cst_21 = arith.constant 0.000000e+00 : f32
    %22 = vector.broadcast %cst_21 : f32 to vector<2x32xf32>
    %23 = vector.extract_strided_slice %12 {offsets = [0, 0, 0], sizes = [2, 1, 128], strides = [1, 1, 1]} : vector<2x8x128xf32> to vector<2x1x128xf32>
    %24 = vector.shape_cast %23 : vector<2x1x128xf32> to vector<2x128xf32>
    %cst_22 = arith.constant dense<0.000000e+00> : vector<2x128xf32>
    %25 = tpu.matmul %19, %2, %cst_22 {dimension_numbers = #tpu.dot_dimension_numbers<[1], [0], [0], [1], [0, 0, 1, 1], [], []>} : vector<2x32xbf16>, vector<32x128xbf16>, vector<2x128xf32> -> vector<2x128xf32>
    %26 = arith.addf %24, %25 : vector<2x128xf32>
    %27 = math.tanh %26 : vector<2x128xf32>
    %cst_23 = arith.constant 5.000000e-01 : f32
    %28 = vector.broadcast %cst_23 : f32 to vector<2x128xf32>
    %29 = arith.mulf %28, %27 : vector<2x128xf32>
    %cst_24 = arith.constant 5.000000e-01 : f32
    %30 = vector.broadcast %cst_24 : f32 to vector<2x128xf32>
    %31 = arith.addf %29, %30 : vector<2x128xf32>
    %32 = vector.extract_strided_slice %31 {offsets = [0, 0], sizes = [2, 32], strides = [1, 1]} : vector<2x128xf32> to vector<2x32xf32>
    %33 = vector.extract_strided_slice %31 {offsets = [0, 32], sizes = [2, 32], strides = [1, 1]} : vector<2x128xf32> to vector<2x32xf32>
    %34 = vector.extract_strided_slice %27 {offsets = [0, 64], sizes = [2, 32], strides = [1, 1]} : vector<2x128xf32> to vector<2x32xf32>
    %35 = vector.extract_strided_slice %31 {offsets = [0, 96], sizes = [2, 32], strides = [1, 1]} : vector<2x128xf32> to vector<2x32xf32>
    %36 = arith.mulf %33, %21 : vector<2x32xf32>
    %37 = arith.mulf %32, %34 : vector<2x32xf32>
    %38 = arith.addf %36, %37 : vector<2x32xf32>
    %39 = math.tanh %38 : vector<2x32xf32>
    %40 = arith.mulf %35, %39 : vector<2x32xf32>
    %41 = arith.truncf %40 : vector<2x32xf32> to vector<2x32xbf16>
    %cst_25 = arith.constant dense<0.000000e+00> : vector<2x128xf32>
    %42 = tpu.matmul %41, %1, %cst_25 {dimension_numbers = #tpu.dot_dimension_numbers<[1], [0], [0], [1], [0, 0, 1, 1], [], []>} : vector<2x32xbf16>, vector<32x128xbf16>, vector<2x128xf32> -> vector<2x128xf32>
    %43 = arith.addf %42, %14 : vector<2x128xf32>
    %cst_26 = arith.constant dense<0.000000e+00> : vector<2x128xf32>
    %44 = tpu.matmul %20, %3, %cst_26 {dimension_numbers = #tpu.dot_dimension_numbers<[1], [0], [0], [1], [0, 0, 1, 1], [], []>} : vector<2x32xbf16>, vector<32x128xbf16>, vector<2x128xf32> -> vector<2x128xf32>
    %45 = arith.addf %43, %44 : vector<2x128xf32>
    %46 = math.tanh %45 : vector<2x128xf32>
    %cst_27 = arith.constant 5.000000e-01 : f32
    %47 = vector.broadcast %cst_27 : f32 to vector<2x128xf32>
    %48 = arith.mulf %47, %46 : vector<2x128xf32>
    %cst_28 = arith.constant 5.000000e-01 : f32
    %49 = vector.broadcast %cst_28 : f32 to vector<2x128xf32>
    %50 = arith.addf %48, %49 : vector<2x128xf32>
    %51 = vector.extract_strided_slice %50 {offsets = [0, 0], sizes = [2, 32], strides = [1, 1]} : vector<2x128xf32> to vector<2x32xf32>
    %52 = vector.extract_strided_slice %50 {offsets = [0, 32], sizes = [2, 32], strides = [1, 1]} : vector<2x128xf32> to vector<2x32xf32>
    %53 = vector.extract_strided_slice %46 {offsets = [0, 64], sizes = [2, 32], strides = [1, 1]} : vector<2x128xf32> to vector<2x32xf32>
    %54 = vector.extract_strided_slice %50 {offsets = [0, 96], sizes = [2, 32], strides = [1, 1]} : vector<2x128xf32> to vector<2x32xf32>
    %55 = arith.mulf %52, %22 : vector<2x32xf32>
    %56 = arith.mulf %51, %53 : vector<2x32xf32>
    %57 = arith.addf %55, %56 : vector<2x32xf32>
    %58 = math.tanh %57 : vector<2x32xf32>
    %59 = arith.mulf %54, %58 : vector<2x32xf32>
    %60 = arith.truncf %59 : vector<2x32xf32> to vector<2x32xbf16>
    %cst_29 = arith.constant dense<0.000000e+00> : vector<2x128xf32>
    %61 = tpu.matmul %60, %15, %cst_29 {dimension_numbers = #tpu.dot_dimension_numbers<[1], [0], [0], [1], [0, 0, 1, 1], [], []>} : vector<2x32xbf16>, vector<32x128xbf16>, vector<2x128xf32> -> vector<2x128xf32>
    %62 = arith.addf %61, %18 : vector<2x128xf32>
    %c0_30 = arith.constant 0 : index
    %c0_31 = arith.constant 0 : index
    %c0_32 = arith.constant 0 : index
    %63 = vector.load %arg10[%c0_30, %c0_31, %c0_32] : memref<2x8x128xf32, #tpu.memory_space<vmem>>, vector<2x1x128xf32>
    %64 = vector.shape_cast %63 : vector<2x1x128xf32> to vector<2x128xf32>
    %65 = vector.shape_cast %62 : vector<2x128xf32> to vector<2x1x128xf32>
    tpu.vector_store %arg10[%c0_30, %c0_31, %c0_32], %65 {strides = array<i32>} : memref<2x8x128xf32, #tpu.memory_space<vmem>>, vector<2x1x128xf32>,
    %66 = vector.extract_strided_slice %12 {offsets = [0, 1, 0], sizes = [2, 1, 128], strides = [1, 1, 1]} : vector<2x8x128xf32> to vector<2x1x128xf32>
    %67 = vector.shape_cast %66 : vector<2x1x128xf32> to vector<2x128xf32>
    %cst_33 = arith.constant dense<0.000000e+00> : vector<2x128xf32>
    %68 = tpu.matmul %41, %2, %cst_33 {dimension_numbers = #tpu.dot_dimension_numbers<[1], [0], [0], [1], [0, 0, 1, 1], [], []>} : vector<2x32xbf16>, vector<32x128xbf16>, vector<2x128xf32> -> vector<2x128xf32>
    %69 = arith.addf %67, %68 : vector<2x128xf32>
    %70 = math.tanh %69 : vector<2x128xf32>
    %cst_34 = arith.constant 5.000000e-01 : f32
    %71 = vector.broadcast %cst_34 : f32 to vector<2x128xf32>
    %72 = arith.mulf %71, %70 : vector<2x128xf32>
    %cst_35 = arith.constant 5.000000e-01 : f32
    %73 = vector.broadcast %cst_35 : f32 to vector<2x128xf32>
    %74 = arith.addf %72, %73 : vector<2x128xf32>
    %75 = vector.extract_strided_slice %74 {offsets = [0, 0], sizes = [2, 32], strides = [1, 1]} : vector<2x128xf32> to vector<2x32xf32>
    %76 = vector.extract_strided_slice %74 {offsets = [0, 32], sizes = [2, 32], strides = [1, 1]} : vector<2x128xf32> to vector<2x32xf32>
    %77 = vector.extract_strided_slice %70 {offsets = [0, 64], sizes = [2, 32], strides = [1, 1]} : vector<2x128xf32> to vector<2x32xf32>
    %78 = vector.extract_strided_slice %74 {offsets = [0, 96], sizes = [2, 32], strides = [1, 1]} : vector<2x128xf32> to vector<2x32xf32>
    %79 = arith.mulf %76, %38 : vector<2x32xf32>
    %80 = arith.mulf %75, %77 : vector<2x32xf32>
    %81 = arith.addf %79, %80 : vector<2x32xf32>
    %82 = math.tanh %81 : vector<2x32xf32>
    %83 = arith.mulf %78, %82 : vector<2x32xf32>
    %84 = arith.truncf %83 : vector<2x32xf32> to vector<2x32xbf16>
    %cst_36 = arith.constant dense<0.000000e+00> : vector<2x128xf32>
    %85 = tpu.matmul %84, %1, %cst_36 {dimension_numbers = #tpu.dot_dimension_numbers<[1], [0], [0], [1], [0, 0, 1, 1], [], []>} : vector<2x32xbf16>, vector<32x128xbf16>, vector<2x128xf32> -> vector<2x128xf32>
    %86 = arith.addf %85, %14 : vector<2x128xf32>
    %cst_37 = arith.constant dense<0.000000e+00> : vector<2x128xf32>
    %87 = tpu.matmul %60, %3, %cst_37 {dimension_numbers = #tpu.dot_dimension_numbers<[1], [0], [0], [1], [0, 0, 1, 1], [], []>} : vector<2x32xbf16>, vector<32x128xbf16>, vector<2x128xf32> -> vector<2x128xf32>
    %88 = arith.addf %86, %87 : vector<2x128xf32>
    %89 = math.tanh %88 : vector<2x128xf32>
    %cst_38 = arith.constant 5.000000e-01 : f32
    %90 = vector.broadcast %cst_38 : f32 to vector<2x128xf32>
    %91 = arith.mulf %90, %89 : vector<2x128xf32>
    %cst_39 = arith.constant 5.000000e-01 : f32
    %92 = vector.broadcast %cst_39 : f32 to vector<2x128xf32>
    %93 = arith.addf %91, %92 : vector<2x128xf32>
    %94 = vector.extract_strided_slice %93 {offsets = [0, 0], sizes = [2, 32], strides = [1, 1]} : vector<2x128xf32> to vector<2x32xf32>
    %95 = vector.extract_strided_slice %93 {offsets = [0, 32], sizes = [2, 32], strides = [1, 1]} : vector<2x128xf32> to vector<2x32xf32>
    %96 = vector.extract_strided_slice %89 {offsets = [0, 64], sizes = [2, 32], strides = [1, 1]} : vector<2x128xf32> to vector<2x32xf32>
    %97 = vector.extract_strided_slice %93 {offsets = [0, 96], sizes = [2, 32], strides = [1, 1]} : vector<2x128xf32> to vector<2x32xf32>
    %98 = arith.mulf %95, %57 : vector<2x32xf32>
    %99 = arith.mulf %94, %96 : vector<2x32xf32>
    %100 = arith.addf %98, %99 : vector<2x32xf32>
    %101 = math.tanh %100 : vector<2x32xf32>
    %102 = arith.mulf %97, %101 : vector<2x32xf32>
    %103 = arith.truncf %102 : vector<2x32xf32> to vector<2x32xbf16>
    %cst_40 = arith.constant dense<0.000000e+00> : vector<2x128xf32>
    %104 = tpu.matmul %103, %15, %cst_40 {dimension_numbers = #tpu.dot_dimension_numbers<[1], [0], [0], [1], [0, 0, 1, 1], [], []>} : vector<2x32xbf16>, vector<32x128xbf16>, vector<2x128xf32> -> vector<2x128xf32>
    %105 = arith.addf %104, %18 : vector<2x128xf32>
    %c0_41 = arith.constant 0 : index
    %c1 = arith.constant 1 : index
    %c0_42 = arith.constant 0 : index
    %106 = vector.load %arg10[%c0_41, %c1, %c0_42] : memref<2x8x128xf32, #tpu.memory_space<vmem>>, vector<2x1x128xf32>
    %107 = vector.shape_cast %106 : vector<2x1x128xf32> to vector<2x128xf32>
    %108 = vector.shape_cast %105 : vector<2x128xf32> to vector<2x1x128xf32>
    tpu.vector_store %arg10[%c0_41, %c1, %c0_42], %108 {strides = array<i32>} : memref<2x8x128xf32, #tpu.memory_space<vmem>>, vector<2x1x128xf32>,
    %109 = vector.extract_strided_slice %12 {offsets = [0, 2, 0], sizes = [2, 1, 128], strides = [1, 1, 1]} : vector<2x8x128xf32> to vector<2x1x128xf32>
    %110 = vector.shape_cast %109 : vector<2x1x128xf32> to vector<2x128xf32>
    %cst_43 = arith.constant dense<0.000000e+00> : vector<2x128xf32>
    %111 = tpu.matmul %84, %2, %cst_43 {dimension_numbers = #tpu.dot_dimension_numbers<[1], [0], [0], [1], [0, 0, 1, 1], [], []>} : vector<2x32xbf16>, vector<32x128xbf16>, vector<2x128xf32> -> vector<2x128xf32>
    %112 = arith.addf %110, %111 : vector<2x128xf32>
    %113 = math.tanh %112 : vector<2x128xf32>
    %cst_44 = arith.constant 5.000000e-01 : f32
    %114 = vector.broadcast %cst_44 : f32 to vector<2x128xf32>
    %115 = arith.mulf %114, %113 : vector<2x128xf32>
    %cst_45 = arith.constant 5.000000e-01 : f32
    %116 = vector.broadcast %cst_45 : f32 to vector<2x128xf32>
    %117 = arith.addf %115, %116 : vector<2x128xf32>
    %118 = vector.extract_strided_slice %117 {offsets = [0, 0], sizes = [2, 32], strides = [1, 1]} : vector<2x128xf32> to vector<2x32xf32>
    %119 = vector.extract_strided_slice %117 {offsets = [0, 32], sizes = [2, 32], strides = [1, 1]} : vector<2x128xf32> to vector<2x32xf32>
    %120 = vector.extract_strided_slice %113 {offsets = [0, 64], sizes = [2, 32], strides = [1, 1]} : vector<2x128xf32> to vector<2x32xf32>
    %121 = vector.extract_strided_slice %117 {offsets = [0, 96], sizes = [2, 32], strides = [1, 1]} : vector<2x128xf32> to vector<2x32xf32>
    %122 = arith.mulf %119, %81 : vector<2x32xf32>
    %123 = arith.mulf %118, %120 : vector<2x32xf32>
    %124 = arith.addf %122, %123 : vector<2x32xf32>
    %125 = math.tanh %124 : vector<2x32xf32>
    %126 = arith.mulf %121, %125 : vector<2x32xf32>
    %127 = arith.truncf %126 : vector<2x32xf32> to vector<2x32xbf16>
    %cst_46 = arith.constant dense<0.000000e+00> : vector<2x128xf32>
    %128 = tpu.matmul %127, %1, %cst_46 {dimension_numbers = #tpu.dot_dimension_numbers<[1], [0], [0], [1], [0, 0, 1, 1], [], []>} : vector<2x32xbf16>, vector<32x128xbf16>, vector<2x128xf32> -> vector<2x128xf32>
    %129 = arith.addf %128, %14 : vector<2x128xf32>
    %cst_47 = arith.constant dense<0.000000e+00> : vector<2x128xf32>
    %130 = tpu.matmul %103, %3, %cst_47 {dimension_numbers = #tpu.dot_dimension_numbers<[1], [0], [0], [1], [0, 0, 1, 1], [], []>} : vector<2x32xbf16>, vector<32x128xbf16>, vector<2x128xf32> -> vector<2x128xf32>
    %131 = arith.addf %129, %130 : vector<2x128xf32>
    %132 = math.tanh %131 : vector<2x128xf32>
    %cst_48 = arith.constant 5.000000e-01 : f32
    %133 = vector.broadcast %cst_48 : f32 to vector<2x128xf32>
    %134 = arith.mulf %133, %132 : vector<2x128xf32>
    %cst_49 = arith.constant 5.000000e-01 : f32
    %135 = vector.broadcast %cst_49 : f32 to vector<2x128xf32>
    %136 = arith.addf %134, %135 : vector<2x128xf32>
    %137 = vector.extract_strided_slice %136 {offsets = [0, 0], sizes = [2, 32], strides = [1, 1]} : vector<2x128xf32> to vector<2x32xf32>
    %138 = vector.extract_strided_slice %136 {offsets = [0, 32], sizes = [2, 32], strides = [1, 1]} : vector<2x128xf32> to vector<2x32xf32>
    %139 = vector.extract_strided_slice %132 {offsets = [0, 64], sizes = [2, 32], strides = [1, 1]} : vector<2x128xf32> to vector<2x32xf32>
    %140 = vector.extract_strided_slice %136 {offsets = [0, 96], sizes = [2, 32], strides = [1, 1]} : vector<2x128xf32> to vector<2x32xf32>
    %141 = arith.mulf %138, %100 : vector<2x32xf32>
    %142 = arith.mulf %137, %139 : vector<2x32xf32>
    %143 = arith.addf %141, %142 : vector<2x32xf32>
    %144 = math.tanh %143 : vector<2x32xf32>
    %145 = arith.mulf %140, %144 : vector<2x32xf32>
    %146 = arith.truncf %145 : vector<2x32xf32> to vector<2x32xbf16>
    %cst_50 = arith.constant dense<0.000000e+00> : vector<2x128xf32>
    %147 = tpu.matmul %146, %15, %cst_50 {dimension_numbers = #tpu.dot_dimension_numbers<[1], [0], [0], [1], [0, 0, 1, 1], [], []>} : vector<2x32xbf16>, vector<32x128xbf16>, vector<2x128xf32> -> vector<2x128xf32>
    %148 = arith.addf %147, %18 : vector<2x128xf32>
    %c0_51 = arith.constant 0 : index
    %c2 = arith.constant 2 : index
    %c0_52 = arith.constant 0 : index
    %149 = vector.load %arg10[%c0_51, %c2, %c0_52] : memref<2x8x128xf32, #tpu.memory_space<vmem>>, vector<2x1x128xf32>
    %150 = vector.shape_cast %149 : vector<2x1x128xf32> to vector<2x128xf32>
    %151 = vector.shape_cast %148 : vector<2x128xf32> to vector<2x1x128xf32>
    tpu.vector_store %arg10[%c0_51, %c2, %c0_52], %151 {strides = array<i32>} : memref<2x8x128xf32, #tpu.memory_space<vmem>>, vector<2x1x128xf32>,
    %152 = vector.extract_strided_slice %12 {offsets = [0, 3, 0], sizes = [2, 1, 128], strides = [1, 1, 1]} : vector<2x8x128xf32> to vector<2x1x128xf32>
    %153 = vector.shape_cast %152 : vector<2x1x128xf32> to vector<2x128xf32>
    %cst_53 = arith.constant dense<0.000000e+00> : vector<2x128xf32>
    %154 = tpu.matmul %127, %2, %cst_53 {dimension_numbers = #tpu.dot_dimension_numbers<[1], [0], [0], [1], [0, 0, 1, 1], [], []>} : vector<2x32xbf16>, vector<32x128xbf16>, vector<2x128xf32> -> vector<2x128xf32>
    %155 = arith.addf %153, %154 : vector<2x128xf32>
    %156 = math.tanh %155 : vector<2x128xf32>
    %cst_54 = arith.constant 5.000000e-01 : f32
    %157 = vector.broadcast %cst_54 : f32 to vector<2x128xf32>
    %158 = arith.mulf %157, %156 : vector<2x128xf32>
    %cst_55 = arith.constant 5.000000e-01 : f32
    %159 = vector.broadcast %cst_55 : f32 to vector<2x128xf32>
    %160 = arith.addf %158, %159 : vector<2x128xf32>
    %161 = vector.extract_strided_slice %160 {offsets = [0, 0], sizes = [2, 32], strides = [1, 1]} : vector<2x128xf32> to vector<2x32xf32>
    %162 = vector.extract_strided_slice %160 {offsets = [0, 32], sizes = [2, 32], strides = [1, 1]} : vector<2x128xf32> to vector<2x32xf32>
    %163 = vector.extract_strided_slice %156 {offsets = [0, 64], sizes = [2, 32], strides = [1, 1]} : vector<2x128xf32> to vector<2x32xf32>
    %164 = vector.extract_strided_slice %160 {offsets = [0, 96], sizes = [2, 32], strides = [1, 1]} : vector<2x128xf32> to vector<2x32xf32>
    %165 = arith.mulf %162, %124 : vector<2x32xf32>
    %166 = arith.mulf %161, %163 : vector<2x32xf32>
    %167 = arith.addf %165, %166 : vector<2x32xf32>
    %168 = math.tanh %167 : vector<2x32xf32>
    %169 = arith.mulf %164, %168 : vector<2x32xf32>
    %170 = arith.truncf %169 : vector<2x32xf32> to vector<2x32xbf16>
    %cst_56 = arith.constant dense<0.000000e+00> : vector<2x128xf32>
    %171 = tpu.matmul %170, %1, %cst_56 {dimension_numbers = #tpu.dot_dimension_numbers<[1], [0], [0], [1], [0, 0, 1, 1], [], []>} : vector<2x32xbf16>, vector<32x128xbf16>, vector<2x128xf32> -> vector<2x128xf32>
    %172 = arith.addf %171, %14 : vector<2x128xf32>
    %cst_57 = arith.constant dense<0.000000e+00> : vector<2x128xf32>
    %173 = tpu.matmul %146, %3, %cst_57 {dimension_numbers = #tpu.dot_dimension_numbers<[1], [0], [0], [1], [0, 0, 1, 1], [], []>} : vector<2x32xbf16>, vector<32x128xbf16>, vector<2x128xf32> -> vector<2x128xf32>
    %174 = arith.addf %172, %173 : vector<2x128xf32>
    %175 = math.tanh %174 : vector<2x128xf32>
    %cst_58 = arith.constant 5.000000e-01 : f32
    %176 = vector.broadcast %cst_58 : f32 to vector<2x128xf32>
    %177 = arith.mulf %176, %175 : vector<2x128xf32>
    %cst_59 = arith.constant 5.000000e-01 : f32
    %178 = vector.broadcast %cst_59 : f32 to vector<2x128xf32>
    %179 = arith.addf %177, %178 : vector<2x128xf32>
    %180 = vector.extract_strided_slice %179 {offsets = [0, 0], sizes = [2, 32], strides = [1, 1]} : vector<2x128xf32> to vector<2x32xf32>
    %181 = vector.extract_strided_slice %179 {offsets = [0, 32], sizes = [2, 32], strides = [1, 1]} : vector<2x128xf32> to vector<2x32xf32>
    %182 = vector.extract_strided_slice %175 {offsets = [0, 64], sizes = [2, 32], strides = [1, 1]} : vector<2x128xf32> to vector<2x32xf32>
    %183 = vector.extract_strided_slice %179 {offsets = [0, 96], sizes = [2, 32], strides = [1, 1]} : vector<2x128xf32> to vector<2x32xf32>
    %184 = arith.mulf %181, %143 : vector<2x32xf32>
    %185 = arith.mulf %180, %182 : vector<2x32xf32>
    %186 = arith.addf %184, %185 : vector<2x32xf32>
    %187 = math.tanh %186 : vector<2x32xf32>
    %188 = arith.mulf %183, %187 : vector<2x32xf32>
    %189 = arith.truncf %188 : vector<2x32xf32> to vector<2x32xbf16>
    %cst_60 = arith.constant dense<0.000000e+00> : vector<2x128xf32>
    %190 = tpu.matmul %189, %15, %cst_60 {dimension_numbers = #tpu.dot_dimension_numbers<[1], [0], [0], [1], [0, 0, 1, 1], [], []>} : vector<2x32xbf16>, vector<32x128xbf16>, vector<2x128xf32> -> vector<2x128xf32>
    %191 = arith.addf %190, %18 : vector<2x128xf32>
    %c0_61 = arith.constant 0 : index
    %c3 = arith.constant 3 : index
    %c0_62 = arith.constant 0 : index
    %192 = vector.load %arg10[%c0_61, %c3, %c0_62] : memref<2x8x128xf32, #tpu.memory_space<vmem>>, vector<2x1x128xf32>
    %193 = vector.shape_cast %192 : vector<2x1x128xf32> to vector<2x128xf32>
    %194 = vector.shape_cast %191 : vector<2x128xf32> to vector<2x1x128xf32>
    tpu.vector_store %arg10[%c0_61, %c3, %c0_62], %194 {strides = array<i32>} : memref<2x8x128xf32, #tpu.memory_space<vmem>>, vector<2x1x128xf32>,
    %195 = vector.extract_strided_slice %12 {offsets = [0, 4, 0], sizes = [2, 1, 128], strides = [1, 1, 1]} : vector<2x8x128xf32> to vector<2x1x128xf32>
    %196 = vector.shape_cast %195 : vector<2x1x128xf32> to vector<2x128xf32>
    %cst_63 = arith.constant dense<0.000000e+00> : vector<2x128xf32>
    %197 = tpu.matmul %170, %2, %cst_63 {dimension_numbers = #tpu.dot_dimension_numbers<[1], [0], [0], [1], [0, 0, 1, 1], [], []>} : vector<2x32xbf16>, vector<32x128xbf16>, vector<2x128xf32> -> vector<2x128xf32>
    %198 = arith.addf %196, %197 : vector<2x128xf32>
    %199 = math.tanh %198 : vector<2x128xf32>
    %cst_64 = arith.constant 5.000000e-01 : f32
    %200 = vector.broadcast %cst_64 : f32 to vector<2x128xf32>
    %201 = arith.mulf %200, %199 : vector<2x128xf32>
    %cst_65 = arith.constant 5.000000e-01 : f32
    %202 = vector.broadcast %cst_65 : f32 to vector<2x128xf32>
    %203 = arith.addf %201, %202 : vector<2x128xf32>
    %204 = vector.extract_strided_slice %203 {offsets = [0, 0], sizes = [2, 32], strides = [1, 1]} : vector<2x128xf32> to vector<2x32xf32>
    %205 = vector.extract_strided_slice %203 {offsets = [0, 32], sizes = [2, 32], strides = [1, 1]} : vector<2x128xf32> to vector<2x32xf32>
    %206 = vector.extract_strided_slice %199 {offsets = [0, 64], sizes = [2, 32], strides = [1, 1]} : vector<2x128xf32> to vector<2x32xf32>
    %207 = vector.extract_strided_slice %203 {offsets = [0, 96], sizes = [2, 32], strides = [1, 1]} : vector<2x128xf32> to vector<2x32xf32>
    %208 = arith.mulf %205, %167 : vector<2x32xf32>
    %209 = arith.mulf %204, %206 : vector<2x32xf32>
    %210 = arith.addf %208, %209 : vector<2x32xf32>
    %211 = math.tanh %210 : vector<2x32xf32>
    %212 = arith.mulf %207, %211 : vector<2x32xf32>
    %213 = arith.truncf %212 : vector<2x32xf32> to vector<2x32xbf16>
    %cst_66 = arith.constant dense<0.000000e+00> : vector<2x128xf32>
    %214 = tpu.matmul %213, %1, %cst_66 {dimension_numbers = #tpu.dot_dimension_numbers<[1], [0], [0], [1], [0, 0, 1, 1], [], []>} : vector<2x32xbf16>, vector<32x128xbf16>, vector<2x128xf32> -> vector<2x128xf32>
    %215 = arith.addf %214, %14 : vector<2x128xf32>
    %cst_67 = arith.constant dense<0.000000e+00> : vector<2x128xf32>
    %216 = tpu.matmul %189, %3, %cst_67 {dimension_numbers = #tpu.dot_dimension_numbers<[1], [0], [0], [1], [0, 0, 1, 1], [], []>} : vector<2x32xbf16>, vector<32x128xbf16>, vector<2x128xf32> -> vector<2x128xf32>
    %217 = arith.addf %215, %216 : vector<2x128xf32>
    %218 = math.tanh %217 : vector<2x128xf32>
    %cst_68 = arith.constant 5.000000e-01 : f32
    %219 = vector.broadcast %cst_68 : f32 to vector<2x128xf32>
    %220 = arith.mulf %219, %218 : vector<2x128xf32>
    %cst_69 = arith.constant 5.000000e-01 : f32
    %221 = vector.broadcast %cst_69 : f32 to vector<2x128xf32>
    %222 = arith.addf %220, %221 : vector<2x128xf32>
    %223 = vector.extract_strided_slice %222 {offsets = [0, 0], sizes = [2, 32], strides = [1, 1]} : vector<2x128xf32> to vector<2x32xf32>
    %224 = vector.extract_strided_slice %222 {offsets = [0, 32], sizes = [2, 32], strides = [1, 1]} : vector<2x128xf32> to vector<2x32xf32>
    %225 = vector.extract_strided_slice %218 {offsets = [0, 64], sizes = [2, 32], strides = [1, 1]} : vector<2x128xf32> to vector<2x32xf32>
    %226 = vector.extract_strided_slice %222 {offsets = [0, 96], sizes = [2, 32], strides = [1, 1]} : vector<2x128xf32> to vector<2x32xf32>
    %227 = arith.mulf %224, %186 : vector<2x32xf32>
    %228 = arith.mulf %223, %225 : vector<2x32xf32>
    %229 = arith.addf %227, %228 : vector<2x32xf32>
    %230 = math.tanh %229 : vector<2x32xf32>
    %231 = arith.mulf %226, %230 : vector<2x32xf32>
    %232 = arith.truncf %231 : vector<2x32xf32> to vector<2x32xbf16>
    %cst_70 = arith.constant dense<0.000000e+00> : vector<2x128xf32>
    %233 = tpu.matmul %232, %15, %cst_70 {dimension_numbers = #tpu.dot_dimension_numbers<[1], [0], [0], [1], [0, 0, 1, 1], [], []>} : vector<2x32xbf16>, vector<32x128xbf16>, vector<2x128xf32> -> vector<2x128xf32>
    %234 = arith.addf %233, %18 : vector<2x128xf32>
    %c0_71 = arith.constant 0 : index
    %c4 = arith.constant 4 : index
    %c0_72 = arith.constant 0 : index
    %235 = vector.load %arg10[%c0_71, %c4, %c0_72] : memref<2x8x128xf32, #tpu.memory_space<vmem>>, vector<2x1x128xf32>
    %236 = vector.shape_cast %235 : vector<2x1x128xf32> to vector<2x128xf32>
    %237 = vector.shape_cast %234 : vector<2x128xf32> to vector<2x1x128xf32>
    tpu.vector_store %arg10[%c0_71, %c4, %c0_72], %237 {strides = array<i32>} : memref<2x8x128xf32, #tpu.memory_space<vmem>>, vector<2x1x128xf32>,
    %238 = vector.extract_strided_slice %12 {offsets = [0, 5, 0], sizes = [2, 1, 128], strides = [1, 1, 1]} : vector<2x8x128xf32> to vector<2x1x128xf32>
    %239 = vector.shape_cast %238 : vector<2x1x128xf32> to vector<2x128xf32>
    %cst_73 = arith.constant dense<0.000000e+00> : vector<2x128xf32>
    %240 = tpu.matmul %213, %2, %cst_73 {dimension_numbers = #tpu.dot_dimension_numbers<[1], [0], [0], [1], [0, 0, 1, 1], [], []>} : vector<2x32xbf16>, vector<32x128xbf16>, vector<2x128xf32> -> vector<2x128xf32>
    %241 = arith.addf %239, %240 : vector<2x128xf32>
    %242 = math.tanh %241 : vector<2x128xf32>
    %cst_74 = arith.constant 5.000000e-01 : f32
    %243 = vector.broadcast %cst_74 : f32 to vector<2x128xf32>
    %244 = arith.mulf %243, %242 : vector<2x128xf32>
    %cst_75 = arith.constant 5.000000e-01 : f32
    %245 = vector.broadcast %cst_75 : f32 to vector<2x128xf32>
    %246 = arith.addf %244, %245 : vector<2x128xf32>
    %247 = vector.extract_strided_slice %246 {offsets = [0, 0], sizes = [2, 32], strides = [1, 1]} : vector<2x128xf32> to vector<2x32xf32>
    %248 = vector.extract_strided_slice %246 {offsets = [0, 32], sizes = [2, 32], strides = [1, 1]} : vector<2x128xf32> to vector<2x32xf32>
    %249 = vector.extract_strided_slice %242 {offsets = [0, 64], sizes = [2, 32], strides = [1, 1]} : vector<2x128xf32> to vector<2x32xf32>
    %250 = vector.extract_strided_slice %246 {offsets = [0, 96], sizes = [2, 32], strides = [1, 1]} : vector<2x128xf32> to vector<2x32xf32>
    %251 = arith.mulf %248, %210 : vector<2x32xf32>
    %252 = arith.mulf %247, %249 : vector<2x32xf32>
    %253 = arith.addf %251, %252 : vector<2x32xf32>
    %254 = math.tanh %253 : vector<2x32xf32>
    %255 = arith.mulf %250, %254 : vector<2x32xf32>
    %256 = arith.truncf %255 : vector<2x32xf32> to vector<2x32xbf16>
    %cst_76 = arith.constant dense<0.000000e+00> : vector<2x128xf32>
    %257 = tpu.matmul %256, %1, %cst_76 {dimension_numbers = #tpu.dot_dimension_numbers<[1], [0], [0], [1], [0, 0, 1, 1], [], []>} : vector<2x32xbf16>, vector<32x128xbf16>, vector<2x128xf32> -> vector<2x128xf32>
    %258 = arith.addf %257, %14 : vector<2x128xf32>
    %cst_77 = arith.constant dense<0.000000e+00> : vector<2x128xf32>
    %259 = tpu.matmul %232, %3, %cst_77 {dimension_numbers = #tpu.dot_dimension_numbers<[1], [0], [0], [1], [0, 0, 1, 1], [], []>} : vector<2x32xbf16>, vector<32x128xbf16>, vector<2x128xf32> -> vector<2x128xf32>
    %260 = arith.addf %258, %259 : vector<2x128xf32>
    %261 = math.tanh %260 : vector<2x128xf32>
    %cst_78 = arith.constant 5.000000e-01 : f32
    %262 = vector.broadcast %cst_78 : f32 to vector<2x128xf32>
    %263 = arith.mulf %262, %261 : vector<2x128xf32>
    %cst_79 = arith.constant 5.000000e-01 : f32
    %264 = vector.broadcast %cst_79 : f32 to vector<2x128xf32>
    %265 = arith.addf %263, %264 : vector<2x128xf32>
    %266 = vector.extract_strided_slice %265 {offsets = [0, 0], sizes = [2, 32], strides = [1, 1]} : vector<2x128xf32> to vector<2x32xf32>
    %267 = vector.extract_strided_slice %265 {offsets = [0, 32], sizes = [2, 32], strides = [1, 1]} : vector<2x128xf32> to vector<2x32xf32>
    %268 = vector.extract_strided_slice %261 {offsets = [0, 64], sizes = [2, 32], strides = [1, 1]} : vector<2x128xf32> to vector<2x32xf32>
    %269 = vector.extract_strided_slice %265 {offsets = [0, 96], sizes = [2, 32], strides = [1, 1]} : vector<2x128xf32> to vector<2x32xf32>
    %270 = arith.mulf %267, %229 : vector<2x32xf32>
    %271 = arith.mulf %266, %268 : vector<2x32xf32>
    %272 = arith.addf %270, %271 : vector<2x32xf32>
    %273 = math.tanh %272 : vector<2x32xf32>
    %274 = arith.mulf %269, %273 : vector<2x32xf32>
    %275 = arith.truncf %274 : vector<2x32xf32> to vector<2x32xbf16>
    %cst_80 = arith.constant dense<0.000000e+00> : vector<2x128xf32>
    %276 = tpu.matmul %275, %15, %cst_80 {dimension_numbers = #tpu.dot_dimension_numbers<[1], [0], [0], [1], [0, 0, 1, 1], [], []>} : vector<2x32xbf16>, vector<32x128xbf16>, vector<2x128xf32> -> vector<2x128xf32>
    %277 = arith.addf %276, %18 : vector<2x128xf32>
    %c0_81 = arith.constant 0 : index
    %c5 = arith.constant 5 : index
    %c0_82 = arith.constant 0 : index
    %278 = vector.load %arg10[%c0_81, %c5, %c0_82] : memref<2x8x128xf32, #tpu.memory_space<vmem>>, vector<2x1x128xf32>
    %279 = vector.shape_cast %278 : vector<2x1x128xf32> to vector<2x128xf32>
    %280 = vector.shape_cast %277 : vector<2x128xf32> to vector<2x1x128xf32>
    tpu.vector_store %arg10[%c0_81, %c5, %c0_82], %280 {strides = array<i32>} : memref<2x8x128xf32, #tpu.memory_space<vmem>>, vector<2x1x128xf32>,
    %281 = vector.extract_strided_slice %12 {offsets = [0, 6, 0], sizes = [2, 1, 128], strides = [1, 1, 1]} : vector<2x8x128xf32> to vector<2x1x128xf32>
    %282 = vector.shape_cast %281 : vector<2x1x128xf32> to vector<2x128xf32>
    %cst_83 = arith.constant dense<0.000000e+00> : vector<2x128xf32>
    %283 = tpu.matmul %256, %2, %cst_83 {dimension_numbers = #tpu.dot_dimension_numbers<[1], [0], [0], [1], [0, 0, 1, 1], [], []>} : vector<2x32xbf16>, vector<32x128xbf16>, vector<2x128xf32> -> vector<2x128xf32>
    %284 = arith.addf %282, %283 : vector<2x128xf32>
    %285 = math.tanh %284 : vector<2x128xf32>
    %cst_84 = arith.constant 5.000000e-01 : f32
    %286 = vector.broadcast %cst_84 : f32 to vector<2x128xf32>
    %287 = arith.mulf %286, %285 : vector<2x128xf32>
    %cst_85 = arith.constant 5.000000e-01 : f32
    %288 = vector.broadcast %cst_85 : f32 to vector<2x128xf32>
    %289 = arith.addf %287, %288 : vector<2x128xf32>
    %290 = vector.extract_strided_slice %289 {offsets = [0, 0], sizes = [2, 32], strides = [1, 1]} : vector<2x128xf32> to vector<2x32xf32>
    %291 = vector.extract_strided_slice %289 {offsets = [0, 32], sizes = [2, 32], strides = [1, 1]} : vector<2x128xf32> to vector<2x32xf32>
    %292 = vector.extract_strided_slice %285 {offsets = [0, 64], sizes = [2, 32], strides = [1, 1]} : vector<2x128xf32> to vector<2x32xf32>
    %293 = vector.extract_strided_slice %289 {offsets = [0, 96], sizes = [2, 32], strides = [1, 1]} : vector<2x128xf32> to vector<2x32xf32>
    %294 = arith.mulf %291, %253 : vector<2x32xf32>
    %295 = arith.mulf %290, %292 : vector<2x32xf32>
    %296 = arith.addf %294, %295 : vector<2x32xf32>
    %297 = math.tanh %296 : vector<2x32xf32>
    %298 = arith.mulf %293, %297 : vector<2x32xf32>
    %299 = arith.truncf %298 : vector<2x32xf32> to vector<2x32xbf16>
    %cst_86 = arith.constant dense<0.000000e+00> : vector<2x128xf32>
    %300 = tpu.matmul %299, %1, %cst_86 {dimension_numbers = #tpu.dot_dimension_numbers<[1], [0], [0], [1], [0, 0, 1, 1], [], []>} : vector<2x32xbf16>, vector<32x128xbf16>, vector<2x128xf32> -> vector<2x128xf32>
    %301 = arith.addf %300, %14 : vector<2x128xf32>
    %cst_87 = arith.constant dense<0.000000e+00> : vector<2x128xf32>
    %302 = tpu.matmul %275, %3, %cst_87 {dimension_numbers = #tpu.dot_dimension_numbers<[1], [0], [0], [1], [0, 0, 1, 1], [], []>} : vector<2x32xbf16>, vector<32x128xbf16>, vector<2x128xf32> -> vector<2x128xf32>
    %303 = arith.addf %301, %302 : vector<2x128xf32>
    %304 = math.tanh %303 : vector<2x128xf32>
    %cst_88 = arith.constant 5.000000e-01 : f32
    %305 = vector.broadcast %cst_88 : f32 to vector<2x128xf32>
    %306 = arith.mulf %305, %304 : vector<2x128xf32>
    %cst_89 = arith.constant 5.000000e-01 : f32
    %307 = vector.broadcast %cst_89 : f32 to vector<2x128xf32>
    %308 = arith.addf %306, %307 : vector<2x128xf32>
    %309 = vector.extract_strided_slice %308 {offsets = [0, 0], sizes = [2, 32], strides = [1, 1]} : vector<2x128xf32> to vector<2x32xf32>
    %310 = vector.extract_strided_slice %308 {offsets = [0, 32], sizes = [2, 32], strides = [1, 1]} : vector<2x128xf32> to vector<2x32xf32>
    %311 = vector.extract_strided_slice %304 {offsets = [0, 64], sizes = [2, 32], strides = [1, 1]} : vector<2x128xf32> to vector<2x32xf32>
    %312 = vector.extract_strided_slice %308 {offsets = [0, 96], sizes = [2, 32], strides = [1, 1]} : vector<2x128xf32> to vector<2x32xf32>
    %313 = arith.mulf %310, %272 : vector<2x32xf32>
    %314 = arith.mulf %309, %311 : vector<2x32xf32>
    %315 = arith.addf %313, %314 : vector<2x32xf32>
    %316 = math.tanh %315 : vector<2x32xf32>
    %317 = arith.mulf %312, %316 : vector<2x32xf32>
    %318 = arith.truncf %317 : vector<2x32xf32> to vector<2x32xbf16>
    %cst_90 = arith.constant dense<0.000000e+00> : vector<2x128xf32>
    %319 = tpu.matmul %318, %15, %cst_90 {dimension_numbers = #tpu.dot_dimension_numbers<[1], [0], [0], [1], [0, 0, 1, 1], [], []>} : vector<2x32xbf16>, vector<32x128xbf16>, vector<2x128xf32> -> vector<2x128xf32>
    %320 = arith.addf %319, %18 : vector<2x128xf32>
    %c0_91 = arith.constant 0 : index
    %c6 = arith.constant 6 : index
    %c0_92 = arith.constant 0 : index
    %321 = vector.load %arg10[%c0_91, %c6, %c0_92] : memref<2x8x128xf32, #tpu.memory_space<vmem>>, vector<2x1x128xf32>
    %322 = vector.shape_cast %321 : vector<2x1x128xf32> to vector<2x128xf32>
    %323 = vector.shape_cast %320 : vector<2x128xf32> to vector<2x1x128xf32>
    tpu.vector_store %arg10[%c0_91, %c6, %c0_92], %323 {strides = array<i32>} : memref<2x8x128xf32, #tpu.memory_space<vmem>>, vector<2x1x128xf32>,
    %324 = vector.extract_strided_slice %12 {offsets = [0, 7, 0], sizes = [2, 1, 128], strides = [1, 1, 1]} : vector<2x8x128xf32> to vector<2x1x128xf32>
    %325 = vector.shape_cast %324 : vector<2x1x128xf32> to vector<2x128xf32>
    %cst_93 = arith.constant dense<0.000000e+00> : vector<2x128xf32>
    %326 = tpu.matmul %299, %2, %cst_93 {dimension_numbers = #tpu.dot_dimension_numbers<[1], [0], [0], [1], [0, 0, 1, 1], [], []>} : vector<2x32xbf16>, vector<32x128xbf16>, vector<2x128xf32> -> vector<2x128xf32>
    %327 = arith.addf %325, %326 : vector<2x128xf32>
    %328 = math.tanh %327 : vector<2x128xf32>
    %cst_94 = arith.constant 5.000000e-01 : f32
    %329 = vector.broadcast %cst_94 : f32 to vector<2x128xf32>
    %330 = arith.mulf %329, %328 : vector<2x128xf32>
    %cst_95 = arith.constant 5.000000e-01 : f32
    %331 = vector.broadcast %cst_95 : f32 to vector<2x128xf32>
    %332 = arith.addf %330, %331 : vector<2x128xf32>
    %333 = vector.extract_strided_slice %332 {offsets = [0, 0], sizes = [2, 32], strides = [1, 1]} : vector<2x128xf32> to vector<2x32xf32>
    %334 = vector.extract_strided_slice %332 {offsets = [0, 32], sizes = [2, 32], strides = [1, 1]} : vector<2x128xf32> to vector<2x32xf32>
    %335 = vector.extract_strided_slice %328 {offsets = [0, 64], sizes = [2, 32], strides = [1, 1]} : vector<2x128xf32> to vector<2x32xf32>
    %336 = vector.extract_strided_slice %332 {offsets = [0, 96], sizes = [2, 32], strides = [1, 1]} : vector<2x128xf32> to vector<2x32xf32>
    %337 = arith.mulf %334, %296 : vector<2x32xf32>
    %338 = arith.mulf %333, %335 : vector<2x32xf32>
    %339 = arith.addf %337, %338 : vector<2x32xf32>
    %340 = math.tanh %339 : vector<2x32xf32>
    %341 = arith.mulf %336, %340 : vector<2x32xf32>
    %342 = arith.truncf %341 : vector<2x32xf32> to vector<2x32xbf16>
    %cst_96 = arith.constant dense<0.000000e+00> : vector<2x128xf32>
    %343 = tpu.matmul %342, %1, %cst_96 {dimension_numbers = #tpu.dot_dimension_numbers<[1], [0], [0], [1], [0, 0, 1, 1], [], []>} : vector<2x32xbf16>, vector<32x128xbf16>, vector<2x128xf32> -> vector<2x128xf32>
    %344 = arith.addf %343, %14 : vector<2x128xf32>
    %cst_97 = arith.constant dense<0.000000e+00> : vector<2x128xf32>
    %345 = tpu.matmul %318, %3, %cst_97 {dimension_numbers = #tpu.dot_dimension_numbers<[1], [0], [0], [1], [0, 0, 1, 1], [], []>} : vector<2x32xbf16>, vector<32x128xbf16>, vector<2x128xf32> -> vector<2x128xf32>
    %346 = arith.addf %344, %345 : vector<2x128xf32>
    %347 = math.tanh %346 : vector<2x128xf32>
    %cst_98 = arith.constant 5.000000e-01 : f32
    %348 = vector.broadcast %cst_98 : f32 to vector<2x128xf32>
    %349 = arith.mulf %348, %347 : vector<2x128xf32>
    %cst_99 = arith.constant 5.000000e-01 : f32
    %350 = vector.broadcast %cst_99 : f32 to vector<2x128xf32>
    %351 = arith.addf %349, %350 : vector<2x128xf32>
    %352 = vector.extract_strided_slice %351 {offsets = [0, 0], sizes = [2, 32], strides = [1, 1]} : vector<2x128xf32> to vector<2x32xf32>
    %353 = vector.extract_strided_slice %351 {offsets = [0, 32], sizes = [2, 32], strides = [1, 1]} : vector<2x128xf32> to vector<2x32xf32>
    %354 = vector.extract_strided_slice %347 {offsets = [0, 64], sizes = [2, 32], strides = [1, 1]} : vector<2x128xf32> to vector<2x32xf32>
    %355 = vector.extract_strided_slice %351 {offsets = [0, 96], sizes = [2, 32], strides = [1, 1]} : vector<2x128xf32> to vector<2x32xf32>
    %356 = arith.mulf %353, %315 : vector<2x32xf32>
    %357 = arith.mulf %352, %354 : vector<2x32xf32>
    %358 = arith.addf %356, %357 : vector<2x32xf32>
    %359 = math.tanh %358 : vector<2x32xf32>
    %360 = arith.mulf %355, %359 : vector<2x32xf32>
    %361 = arith.truncf %360 : vector<2x32xf32> to vector<2x32xbf16>
    %cst_100 = arith.constant dense<0.000000e+00> : vector<2x128xf32>
    %362 = tpu.matmul %361, %15, %cst_100 {dimension_numbers = #tpu.dot_dimension_numbers<[1], [0], [0], [1], [0, 0, 1, 1], [], []>} : vector<2x32xbf16>, vector<32x128xbf16>, vector<2x128xf32> -> vector<2x128xf32>
    %363 = arith.addf %362, %18 : vector<2x128xf32>
    %c0_101 = arith.constant 0 : index
    %c7 = arith.constant 7 : index
    %c0_102 = arith.constant 0 : index
    %364 = vector.load %arg10[%c0_101, %c7, %c0_102] : memref<2x8x128xf32, #tpu.memory_space<vmem>>, vector<2x1x128xf32>
    %365 = vector.shape_cast %364 : vector<2x1x128xf32> to vector<2x128xf32>
    %366 = vector.shape_cast %363 : vector<2x128xf32> to vector<2x1x128xf32>
    tpu.vector_store %arg10[%c0_101, %c7, %c0_102], %366 {strides = array<i32>} : memref<2x8x128xf32, #tpu.memory_space<vmem>>, vector<2x1x128xf32>,
    return
  }
  func.func @transform_0(%arg0: i32) -> (i32, i32, i32) {
    %c0_i32 = arith.constant 0 : i32
    %c0_i32_0 = arith.constant 0 : i32
    %c0_i32_1 = arith.constant 0 : i32
    %c0_i32_2 = arith.constant 0 : i32
    return %c0_i32, %c0_i32_0, %c0_i32_1 : i32, i32, i32
  }
  func.func @transform_1(%arg0: i32) -> (i32, i32) {
    %c0_i32 = arith.constant 0 : i32
    %c0_i32_0 = arith.constant 0 : i32
    %c0_i32_1 = arith.constant 0 : i32
    return %c0_i32, %c0_i32_0 : i32, i32
  }
  func.func @transform_2(%arg0: i32) -> (i32, i32) {
    %c0_i32 = arith.constant 0 : i32
    %c0_i32_0 = arith.constant 0 : i32
    %c0_i32_1 = arith.constant 0 : i32
    return %c0_i32, %c0_i32_0 : i32, i32
  }
  func.func @transform_3(%arg0: i32) -> (i32, i32) {
    %c0_i32 = arith.constant 0 : i32
    %c0_i32_0 = arith.constant 0 : i32
    %c0_i32_1 = arith.constant 0 : i32
    return %c0_i32, %c0_i32_0 : i32, i32
  }
  func.func @transform_4(%arg0: i32) -> (i32, i32) {
    %c0_i32 = arith.constant 0 : i32
    %c0_i32_0 = arith.constant 0 : i32
    %c0_i32_1 = arith.constant 0 : i32
    return %c0_i32, %c0_i32_0 : i32, i32
  }
  func.func @transform_5(%arg0: i32) -> (i32, i32) {
    %c0_i32 = arith.constant 0 : i32
    %c0_i32_0 = arith.constant 0 : i32
    %c0_i32_1 = arith.constant 0 : i32
    return %c0_i32, %c0_i32_0 : i32, i32
  }
  func.func @transform_6(%arg0: i32) -> (i32, i32) {
    %c0_i32 = arith.constant 0 : i32
    %c0_i32_0 = arith.constant 0 : i32
    %c0_i32_1 = arith.constant 0 : i32
    return %c0_i32, %c0_i32_0 : i32, i32
  }
  func.func @transform_7(%arg0: i32) -> (i32, i32) {
    %c0_i32 = arith.constant 0 : i32
    %c0_i32_0 = arith.constant 0 : i32
    %c0_i32_1 = arith.constant 0 : i32
    return %c0_i32, %c0_i32_0 : i32, i32
  }
  func.func @transform_8(%arg0: i32) -> (i32, i32) {
    %c0_i32 = arith.constant 0 : i32
    %c0_i32_0 = arith.constant 0 : i32
    %c0_i32_1 = arith.constant 0 : i32
    return %c0_i32, %c0_i32_0 : i32, i32
  }
  func.func @transform_9(%arg0: i32) -> (i32, i32, i32) {
    %c0_i32 = arith.constant 0 : i32
    %c0_i32_0 = arith.constant 0 : i32
    %c0_i32_1 = arith.constant 0 : i32
    %c0_i32_2 = arith.constant 0 : i32
    return %c0_i32, %c0_i32_0, %c0_i32_1 : i32, i32, i32
  }
}

</mosaic_0001>

<bundles_post_ra>
// kernel: lstm_forward.1
= control target key start
LH: loop header
LB: loop body
LE: loop exit
PB: predicated region body
PF: predicated region fallthrough
CT: control target
= control target key end

     0   :  { %14 = vsyncpa [#allocation3], 0  ;;  %s3970_s0 = inlined_call_operand.hbm [shape: f32[2,8,28], index: 0, kind: input, shape index: {}]   ;;  %s3971_s1 = inlined_call_operand.hbm [shape: bf16[28,128], index: 1, kind: input, shape index: {}]   ;;  %s3972_s2 = inlined_call_operand.hbm [shape: bf16[32,128], index: 2, kind: input, shape index: {}]   ;;  %s3973_s3 = inlined_call_operand.vmem [shape: f32[1,128], index: 3, kind: input, shape index: {}]   ;;  %s3974_s4 = inlined_call_operand.hbm [shape: bf16[32,128], index: 4, kind: input, shape index: {}]   ;;  %s3975_s5 = inlined_call_operand.vmem [shape: bf16[32,128], index: 5, kind: input, shape index: {}]   ;;  %s3976_s6 = inlined_call_operand.vmem [shape: f32[1,128], index: 6, kind: input, shape index: {}]   ;;  %s3977_s7 = inlined_call_operand.hbm [shape: bf16[32,128], index: 7, kind: input, shape index: {}]   ;;  %s3978_s8 = inlined_call_operand.vmem [shape: f32[1,128], index: 8, kind: input, shape index: {}]   ;;  %s3979_s9 = inlined_call_operand.hbm [shape: f32[2,8,128], index: 9, kind: output, shape index: {}]  }
   0x1   :  { %15 = vsyncpa [#allocation6], 0 }
   0x2   :  { %16 = vsyncpa [#allocation9], 0 }
   0x3   :  { %17 = vsyncpa [#allocation4], 0  ;;  %s3266_s30 = smov [#allocation5]   ;;  %s3126_s13 = scalar_lea.hbm %s3971_s1, 256 }
   0x4   :  { %s35_s10 = sshll.u32 %s3266_s30, 4  ;;  %p3127_p0 = scmp.ne.s32.totalorder %s3971_s1, %s3126_s13  ;;  %s36_s10 = int_to_ptr.vmem [resolvable:$true] %s35_s10 }
   0x5   :  { %p3130_p1 = scmp.lt.u32.totalorder %s3126_s13, %s3971_s1 }
   0x7   :  { %p3132_p2 = pnand %p3130_p1, %p3127_p0 }
   0x9   :  { %3135 = shalt.err (!%p3132_p2)
}
   0xa   :  { %s3136_s18 = scalar_lea.vmem %s36_s10, 256  ;;  %p3141_p4 = scmp.lt.s32.totalorder %s36_s10, %s36_s10 }
   0xb   :  { %p3137_p3 = scmp.ne.s32.totalorder %s36_s10, %s3136_s18  ;;  %p3142_p5 = scmp.lt.s32.totalorder %s3136_s18, %s3136_s18 }
   0xd   :  { %p3143_p6 = por %p3142_p5, %p3141_p4 }
   0xf   :  { %p3144_p7 = pnand %p3143_p6, %p3137_p3 }
  0x11   :  { %3147 = shalt.err (!%p3144_p7)
}
  0x12   :  { %s3267_s19 = smov 64   ;;  %s3268_s20 = smov 4  }
  0x13   :  { %41 = dma.hbm_to_vmem [thread:$0]  %s3971_s1, 256, %s36_s10, [#allocation6], %s3267_s19, %s3267_s19, %s3268_s20  }
  0x14   :  { %s3269_s23 = smov [#allocation8]   ;;  %s3270_s25 = smov [#allocation2]  }
  0x15   :  { %s61_s24 = sshll.u32 %s3269_s23, 4  ;;  %s23_s26 = sshll.u32 %s3270_s25, 4  ;;  %s62_s24 = int_to_ptr.vmem [resolvable:$true] %s61_s24  ;;  %s24_s26 = int_to_ptr.vmem [resolvable:$true] %s23_s26 }
  0x16   :  { %s3148_s29 = scalar_lea.hbm %s3974_s4, 256 }
  0x17   :  { %p3149_p8 = scmp.ne.s32.totalorder %s3974_s4, %s3148_s29  ;;  %p3152_p9 = scmp.lt.u32.totalorder %s3148_s29, %s3974_s4 }
  0x19   :  { %p3154_p10 = pnand %p3152_p9, %p3149_p8 }
  0x1b   :  { %3157 = shalt.err (!%p3154_p10)
}
  0x1c   :  { %s3158_s1 = scalar_lea.vmem %s62_s24, 256  ;;  %p3163_p12 = scmp.lt.s32.totalorder %s62_s24, %s62_s24 }
  0x1d   :  { %p3159_p11 = scmp.ne.s32.totalorder %s62_s24, %s3158_s1  ;;  %p3164_p13 = scmp.lt.s32.totalorder %s3158_s1, %s3158_s1 }
  0x1f   :  { %p3165_p0 = por %p3164_p13, %p3163_p12 }
  0x21   :  { %p3166_p1 = pnand %p3165_p0, %p3159_p11 }
  0x23   :  { %3169 = shalt.err (!%p3166_p1)
}
  0x24   :  { %67 = dma.hbm_to_vmem [thread:$0]  %s3974_s4, 256, %s62_s24, [#allocation9], %s3267_s19, %s3267_s19, %s3268_s20  }
  0x25   :  { %s3170_s17 = scalar_lea.hbm %s3970_s0, 256 }
  0x26   :  { %p3171_p2 = scmp.ne.s32.totalorder %s3970_s0, %s3170_s17  ;;  %p3174_p3 = scmp.lt.u32.totalorder %s3170_s17, %s3970_s0 }
  0x28   :  { %p3176_p4 = pnand %p3174_p3, %p3171_p2 }
  0x2a   :  { %3179 = shalt.err (!%p3176_p4)
}
  0x2b   :  { %s3180_s25 = scalar_lea.vmem %s24_s26, 256  ;;  %p3185_p6 = scmp.lt.s32.totalorder %s24_s26, %s24_s26 }
  0x2c   :  { %p3181_p5 = scmp.ne.s32.totalorder %s24_s26, %s3180_s25  ;;  %p3186_p7 = scmp.lt.s32.totalorder %s3180_s25, %s3180_s25 }
  0x2e   :  { %p3187_p8 = por %p3186_p7, %p3185_p6 }
  0x30   :  { %p3188_p9 = pnand %p3187_p8, %p3181_p5 }
  0x32   :  { %3191 = shalt.err (!%p3188_p9)
}
  0x33   :  { %s3271_s4 = smov 128   ;;  %s3272_s24 = smov 8  }
  0x34   :  { %29 = dma.hbm_to_vmem [thread:$0]  %s3970_s0, 256, %s24_s26, [#allocation3], %s3271_s4, %s3271_s4, %s3272_s24  }
  0x35   :  { %s3273_s29 = smov [#allocation7]   ;;  %s3274_s11 = smov [#allocation10]  }
  0x36   :  { %s47_s30 = sshll.u32 %s3273_s29, 4  ;;  %s77_s12 = sshll.u32 %s3274_s11, 4  ;;  %s48_s30 = int_to_ptr.vmem [resolvable:$true] %s47_s30  ;;  %s78_s12 = int_to_ptr.vmem [resolvable:$true] %s77_s12 }
  0x37   :  { %s3192_s10 = scalar_lea.hbm %s3972_s2, 256 }
  0x38   :  { %p3193_p10 = scmp.ne.s32.totalorder %s3972_s2, %s3192_s10  ;;  %p3196_p11 = scmp.lt.u32.totalorder %s3192_s10, %s3972_s2 }
  0x3a   :  { %p3198_p12 = pnand %p3196_p11, %p3193_p10 }
  0x3c   :  { %3201 = shalt.err (!%p3198_p12)
}
  0x3d   :  { %s3202_s0 = scalar_lea.vmem %s48_s30, 256  ;;  %p3207_p0 = scmp.lt.s32.totalorder %s48_s30, %s48_s30 }
  0x3e   :  { %p3203_p13 = scmp.ne.s32.totalorder %s48_s30, %s3202_s0  ;;  %p3208_p1 = scmp.lt.s32.totalorder %s3202_s0, %s3202_s0 }
  0x40   :  { %p3209_p2 = por %p3208_p1, %p3207_p0 }
  0x42   :  { %p3210_p3 = pnand %p3209_p2, %p3203_p13 }
  0x44   :  { %3213 = shalt.err (!%p3210_p3)
}
  0x45   :  { %53 = dma.hbm_to_vmem [thread:$0]  %s3972_s2, 256, %s48_s30, [#allocation6], %s3267_s19, %s3267_s19, %s3268_s20  }
  0x46   :  { %s3214_s23 = scalar_lea.hbm %s3977_s7, 256 }
  0x47   :  { %p3215_p4 = scmp.ne.s32.totalorder %s3977_s7, %s3214_s23  ;;  %p3218_p5 = scmp.lt.u32.totalorder %s3214_s23, %s3977_s7 }
  0x49   :  { %p3220_p6 = pnand %p3218_p5, %p3215_p4 }
  0x4b   :  { %3223 = shalt.err (!%p3220_p6)
}
  0x4c   :  { %s3224_s11 = scalar_lea.vmem %s78_s12, 256  ;;  %p3229_p8 = scmp.lt.s32.totalorder %s78_s12, %s78_s12 }
  0x4d   :  { %p3225_p7 = scmp.ne.s32.totalorder %s78_s12, %s3224_s11  ;;  %p3230_p9 = scmp.lt.s32.totalorder %s3224_s11, %s3224_s11 }
  0x4f   :  { %p3231_p10 = por %p3230_p9, %p3229_p8 }
  0x51   :  { %p3232_p11 = pnand %p3231_p10, %p3225_p7 }
  0x53   :  { %3235 = shalt.err (!%p3232_p11)
}
  0x54   :  { %83 = dma.hbm_to_vmem [thread:$0]  %s3977_s7, 256, %s78_s12, [#allocation9], %s3267_s19, %s3267_s19, %s3268_s20  }
  0x55   :  { %3258 = dma.done.wait [#allocation3], 256  }
  0x56   :  { %3259 = vsyncadd [#allocation3], 4294967040 }
  0x57   :  { %3260 = dma.done.wait [#allocation6], 512  }
  0x58   :  { %3261 = vsyncadd [#allocation6], 4294966784 }
  0x59   :  { %3262 = dma.done.wait [#allocation9], 512  }
  0x5a   :  { %3263 = vsyncadd [#allocation9], 4294966784  ;;  %v3275_v0 = vmov 0.0   ;;  %vm3276_vm0 = vmmov 0   ;;  %v3010_v1 = vld [vmem:[#allocation5] sm:$0xff]   ;;  %v3412_v2 = vld [vmem:[#allocation7] sm:$0xff]  }
  0x5b   :  { %2691 = vmatprep.subr.bf16.mxu0 %v3275_v0  ;;  %2699 = vmatprep.subr.bf16.mxu1 %v3275_v0  ;;  %vm144_vm1 = vcmask 1045504   ;;  %v3012_v3 = vld [vmem:[#allocation5 + $0x8] sm:$0x3f]   ;;  %v3416_v4 = vld [vmem:[#allocation7 + $0x8] sm:$0xff]   ;;  %v120_v6 = vld [vmem:[#allocation2] sm:$0xff]  ;;  %vm140_vm2 = vcmask 228352  }
  0x5c   :  { %2695 = vmatprep.mubr.msk.bf16.mxu0 %vm3276_vm0, %v3275_v0  ;;  %2703 = vmatprep.mubr.msk.bf16.mxu1 %vm3276_vm0, %v3275_v0  ;;  %v146_v5 = vsel %vm144_vm1, %v3012_v3, 0  ;;  %v121_v7 = vld [vmem:[#allocation2 + $0x8] sm:$0xff]  ;;  %v3277_v9 = vmov 0   ;;  %v2532_v10 = vld [vmem:[%s3973_s3] ss:$0 sm:$0xff]  ;;  %s3278_s3 = smov 32  }
  0x5d   :  { %2692 = vmatpush3.bf16.msra.mxu0 %v3010_v1  ;;  %2700 = vmatpush3.bf16.msra.mxu1 %v3412_v2  ;;  %v122_v8 = vpack.c.bf16 %v121_v7, %v120_v6  ;;  %v3447_v41 = vld [vmem:[#allocation8] sm:$0xff]   ;;  %v3450_v42 = vld [vmem:[#allocation8 + $0x8] sm:$0xff]   ;;  %vm315_vm3 = vcmask 1041409   ;;  %vm218_vm4 = vcmask 261120   ;;  %v3461_v55 = vld [vmem:[%s3975_s5] sm:$0xff]  }
  0x5e   :  { %2693 = vmatprep.subr.bf16.mxu0 %v3275_v0  ;;  %2701 = vmatprep.subr.bf16.mxu1 %v3275_v0  ;;  %v3468_v57 = vld [vmem:[%s3975_s5 + $0x8] sm:$0xff]   ;;  %v3485_v58 = vld [vmem:[%s3976_s6] ss:$0 sm:$0xff] }
  0x61   :  { %2694 = vmatpush3.bf16.msra.mxu0 %v146_v5  ;;  %2702 = vmatpush3.bf16.msra.mxu1 %v3416_v4 }
  0x62   :  { %2707 = vmatprep.subr.bf16.mxu0 %v3275_v0  ;;  %2723 = vmatprep.subr.bf16.mxu1 %v3275_v0 }
  0x64   :  { %2696 = vmatmul.mubr.msk.bf16.vlgmr.msra.gmra.mrb[0].mxu0 %vm140_vm2, %v122_v8  ;;  %2704 = vmatmul.mubr.bf16.vlgmr.msra.gmra.mrb[0].mxu1 %v3277_v9 }
  0x65   :  { %2711 = vmatprep.mubr.msk.bf16.mxu0 %vm3276_vm0, %v3275_v0  ;;  %2727 = vmatprep.mubr.msk.bf16.mxu1 %vm3276_vm0, %v3275_v0 }
  0x66   :  { %2708 = vmatpush3.bf16.msra.mxu0 %v3447_v41 }
  0x67   :  { %2709 = vmatprep.subr.bf16.mxu0 %v3275_v0 }
  0x6a   :  { %2710 = vmatpush3.bf16.msra.mxu0 %v3450_v42 }
  0x6b   :  { %2715 = vmatprep.subr.bf16.mxu0 %v3275_v0 }
 0x137   :  { %v182_v11 = vpop.f32.mrb[0].mxu0  ;;  %v256_v12 = vpop.f32.mrb[0].mxu1 }
 0x138   :  { %v2697_v13 = vpop.f32.mrb[1].mxu0  ;;  %v263_v14 = vrot.slane %v256_v12, 1  ;;  %v2705_v15 = vpop.f32.mrb[1].mxu1  ;;  %v3430_v17 = vadd.f32 %v2532_v10, %v182_v11  ;;  %v3493_v11 = vld [vmem:[#allocation10] sm:$0xff]  }
 0x139   :  { %v185_v16 = vpop.f32.mrb[2].mxu0  ;;  %v259_v19 = vpop.f32.mrb[2].mxu1  ;;  %2724 = vmatpush3.bf16.msra.mxu1 %v3493_v11 }
 0x13a   :  { %v3432_v18 = vadd.f32 %v2532_v10, %v185_v16  ;;  %v2698_v20 = vpop.f32.mrb[3].mxu0  ;;  %v2706_v21 = vpop.f32.mrb[3].mxu1  ;;  %v266_v23 = vadd.f32 %v256_v12, %v3430_v17  ;;  %v3496_v12 = vld [vmem:[#allocation10 + $0x8] sm:$0xff]   ;;  %2725 = vmatprep.subr.bf16.mxu1 %v3275_v0 }
 0x13b   :  { %v3279_v20 = vmov 1966171168  }
 0x13c   :  { %v267_v22 = vadd.f32 %v263_v14, %v3432_v18  ;;  %v509_v21 = vunpack.c.l.s4 %v3279_v20 }
 0x13d   :  { %2726 = vmatpush3.bf16.msra.mxu1 %v3496_v12 }
 0x13e   :  { %3020 = vtanh.f32 %v267_v22  ;;  %2731 = vmatprep.subr.bf16.mxu1 %v3275_v0  ;;  %v511_v22 = vlaneseq }
 0x13f   :  { %3022 = vtanh.f32 %v266_v23  ;;  %v510_v23 = vunpack.c.0.s8 %v509_v21 }
 0x148   :  { %v3021_v24 = vpop.eup %3020 }
 0x149   :  { %280 = vrot.lane.b32.xlu0 %v3021_v24, %s3267_s19  ;;  %v3023_v25 = vpop.eup %3022  ;;  %v271_v26 = vmul.f32 0.5, %v3021_v24  ;;  %v512_v24 = vshrl.u32 %v511_v22, 7 }
 0x14a   :  { %v270_v28 = vmul.f32 0.5, %v3023_v25 }
 0x14b   :  { %v273_v27 = vadd.f32 0.5, %v271_v26  ;;  %v3525_v26 = vsub.s32 %v510_v23, %v512_v24 }
 0x14c   :  { %v272_v31 = vadd.f32 0.5, %v270_v28 }
 0x14d   :  { %278 = vrot.lane.b32.xlu0 %v3023_v25, %s3267_s19  ;;  %v275_v34 = vmul.f32 0.0, %v273_v27  ;;  %v3523_v25 = vld [vmem:[%s3978_s8] ss:$0 sm:$0xff] }
 0x14e   :  { %v274_v37 = vmul.f32 0.0, %v272_v31 }
 0x1bb   :  { %v281_v29 = vpop.permute.xlu0 %280 }
 0x1bc   :  { %v285_v30 = vmul.f32 %v281_v29, %v273_v27 }
 0x1be   :  { %290 = vrot.lane.b32.xlu1 %v285_v30, %s3278_s3 }
 0x1bf   :  { %v279_v32 = vpop.permute.xlu0 %278 }
 0x1c0   :  { %v284_v33 = vmul.f32 %v279_v32, %v272_v31 }
 0x1c2   :  { %288 = vrot.lane.b32.xlu1 %v284_v33, %s3278_s3 }
 0x230   :  { %v291_v35 = vpop.permute.xlu1 %290 }
 0x231   :  { %v3440_v36 = vadd.f32 %v291_v35, %v275_v34 }
 0x233   :  { %3024 = vtanh.f32 %v3440_v36 }
 0x234   :  { %v289_v38 = vpop.permute.xlu1 %288 }
 0x235   :  { %v3443_v39 = vadd.f32 %v289_v38, %v274_v37 }
 0x237   :  { %3026 = vtanh.f32 %v3443_v39 }
 0x23d   :  { %v3025_v40 = vpop.eup %3024 }
 0x23e   :  { %302 = vrot.lane.b32.xlu0 %v3025_v40, %s3267_s19 }
 0x241   :  { %v3027_v43 = vpop.eup %3026 }
 0x242   :  { %300 = vrot.lane.b32.xlu1 %v3027_v43, %s3267_s19 }
 0x2b0   :  { %v303_v44 = vpop.permute.xlu0 %302 }
 0x2b1   :  { %v307_v45 = vmul.f32 %v303_v44, %v273_v27 }
 0x2b3   :  { %v309_v46 = vpack.c.bf16 %v307_v45, %v307_v45 }
 0x2b4   :  { %v301_v47 = vpop.permute.xlu1 %300 }
 0x2b5   :  { %v313_v48 = vunpack.c.l.b16 %v309_v46  ;;  %v306_v49 = vmul.f32 %v301_v47, %v272_v31 }
 0x2b7   :  { %v308_v50 = vpack.c.bf16 %v306_v49, %v306_v49  ;;  %v314_v51 = vrot.slane %v313_v48, 7 }
 0x2b9   :  { %v312_v52 = vunpack.c.l.b16 %v308_v50 }
 0x2bb   :  { %v316_v53 = vsel %vm315_vm3, %v314_v51, %v312_v52 }
 0x2bc   :  { %v317_v54 = vpack.c.b16 %v316_v53, %v316_v53 }
 0x2be   :  { %318 = vrot.lane.b32.xlu0 %v317_v54, %s3278_s3 }
 0x330   :  { %v319_v56 = vpop.permute.xlu0 %318 }
 0x331   :  { %2712 = vmatmul.mubr.msk.bf16.vlgmr.msra.gmra.mrb[4].mxu0 %vm218_vm4, %v319_v56 }
 0x332   :  { %2716 = vmatpush3.bf16.msra.mxu0 %v3461_v55  ;;  %2719 = vmatprep.mubr.msk.bf16.mxu0 %vm3276_vm0, %v3275_v0 }
 0x333   :  { %2717 = vmatprep.subr.bf16.mxu0 %v3275_v0 }
 0x336   :  { %2718 = vmatpush3.bf16.msra.mxu0 %v3468_v57 }
 0x337   :  { %2739 = vmatprep.subr.bf16.mxu0 %v3275_v0 }
 0x33d   :  { %2720 = vmatmul.mubr.bf16.vlgmr.msra.gmra.mrb[4].mxu0 %v3277_v9 }
 0x33e   :  { %2740 = vmatpush3.bf16.msra.mxu0 %v3447_v41  ;;  %2743 = vmatprep.mubr.msk.bf16.mxu0 %vm3276_vm0, %v3275_v0 }
 0x33f   :  { %2741 = vmatprep.subr.bf16.mxu0 %v3275_v0 }
 0x342   :  { %2742 = vmatpush3.bf16.msra.mxu0 %v3450_v42 }
 0x343   :  { %2747 = vmatprep.subr.bf16.mxu0 %v3275_v0 }
 0x410   :  { %v421_v59 = vpop.f32.mrb[4].mxu0 }
 0x411   :  { %v2955_v60 = vadd.f32 %v3485_v58, %v421_v59  ;;  %v2721_v61 = vpop.f32.mrb[5].mxu0  ;;  %v588_v59 = vrot.slane %v3443_v39, 7 }
 0x412   :  { %v424_v62 = vpop.f32.mrb[6].mxu0 }
 0x413   :  { %3028 = vtanh.f32 %v2955_v60  ;;  %v2722_v63 = vpop.f32.mrb[7].mxu0 }
 0x41d   :  { %v3029_v1 = vpop.eup %3028 }
 0x41e   :  { %433 = vrot.lane.b32.xlu1 %v3029_v1, %s3267_s19  ;;  %v429_v3 = vmul.f32 0.5, %v3029_v1 }
 0x420   :  { %v430_v5 = vadd.f32 0.5, %v429_v3 }
 0x422   :  { %v431_v8 = vmul.f32 0.0, %v430_v5 }
 0x490   :  { %v434_v6 = vpop.permute.xlu1 %433 }
 0x491   :  { %v436_v7 = vmul.f32 %v434_v6, %v430_v5 }
 0x493   :  { %438 = vrot.lane.b32.xlu0 %v436_v7, %s3278_s3 }
 0x505   :  { %v439_v9 = vpop.permute.xlu0 %438 }
 0x506   :  { %v3490_v10 = vadd.f32 %v439_v9, %v431_v8 }
 0x508   :  { %3030 = vtanh.f32 %v3490_v10 }
 0x512   :  { %v3031_v13 = vpop.eup %3030 }
 0x513   :  { %444 = vrot.lane.b32.xlu1 %v3031_v13, %s3267_s19 }
 0x585   :  { %v445_v14 = vpop.permute.xlu1 %444 }
 0x586   :  { %v447_v15 = vmul.f32 %v445_v14, %v430_v5 }
 0x588   :  { %v448_v16 = vpack.c.bf16 %v447_v15, %v447_v15 }
 0x58a   :  { %450 = vrot.lane.b32.xlu0 %v448_v16, %s3278_s3 }
 0x5fc   :  { %v3503_v19 = vpop.permute.xlu0 %450 }
 0x5fd   :  { %2728 = vmatmul.mubr.msk.bf16.vlgmr.msra.gmra.mrb[4].mxu1 %vm218_vm4, %v3503_v19 }
 0x5fe   :  { %2732 = vmatpush3.bf16.msra.mxu1 %v3412_v2  ;;  %2735 = vmatprep.mubr.msk.bf16.mxu1 %vm3276_vm0, %v3275_v0 }
 0x5ff   :  { %2733 = vmatprep.subr.bf16.mxu1 %v3275_v0 }
 0x602   :  { %2734 = vmatpush3.bf16.msra.mxu1 %v3416_v4 }
 0x603   :  { %2755 = vmatprep.subr.bf16.mxu1 %v3275_v0 }
 0x605   :  { %2736 = vmatmul.mubr.msk.bf16.vlgmr.msra.gmra.mrb[8].mxu1 %vm218_vm4, %v319_v56  ;;  %v589_v56 = vrot.slane %v3440_v36, 7 }
 0x606   :  { %2756 = vmatpush3.bf16.msra.mxu1 %v3493_v11  ;;  %2759 = vmatprep.mubr.msk.bf16.mxu1 %vm3276_vm0, %v3275_v0 }
 0x607   :  { %2757 = vmatprep.subr.bf16.mxu1 %v3275_v0 }
 0x60a   :  { %2758 = vmatpush3.bf16.msra.mxu1 %v3496_v12 }
 0x60b   :  { %2763 = vmatprep.subr.bf16.mxu1 %v3275_v0 }
 0x6d0   :  { %v501_v27 = vpop.f32.mrb[4].mxu1 }
 0x6d1   :  { %v502_v28 = vadd.f32 %v3523_v25, %v501_v27  ;;  %v2729_v29 = vpop.f32.mrb[5].mxu1 }
 0x6d2   :  { %v504_v30 = vpop.f32.mrb[6].mxu1 }
 0x6d3   :  { %v514_v31 = vrot.slane %v502_v28, %v3525_v26  ;;  %v2730_v32 = vpop.f32.mrb[7].mxu1 }
 0x6d5   :  { %v515_v33 = vcombine.high %v514_v31, %v514_v31  ;;  %2548 = vst.sshfl [vmem:[#allocation11] sm:$0x1 pattern:$0x73625140] %v514_v31 }
 0x6d7   :  { %2549 = vst.sshfl [vmem:[#allocation11 + $0x8] sm:$0x1 pattern:$0x73625140] %v515_v33 }
 0x6d8   :  { %v568_v34 = vpop.f32.mrb[8].mxu1 }
 0x6d9   :  { %v575_v35 = vrot.slane %v568_v34, 7  ;;  %v579_v37 = vadd.f32 %v568_v34, %v3432_v18  ;;  %v2737_v38 = vpop.f32.mrb[9].mxu1 }
 0x6da   :  { %v571_v40 = vpop.f32.mrb[10].mxu1 }
 0x6db   :  { %v578_v43 = vadd.f32 %v575_v35, %v3430_v17  ;;  %3032 = vtanh.f32 %v579_v37  ;;  %v2738_v44 = vpop.f32.mrb[11].mxu1 }
 0x6dd   :  { %3034 = vtanh.f32 %v578_v43 }
 0x6e5   :  { %v3033_v45 = vpop.eup %3032 }
 0x6e6   :  { %598 = vrot.lane.b32.xlu0 %v3033_v45, %s3267_s19  ;;  %v583_v47 = vmul.f32 0.5, %v3033_v45 }
 0x6e7   :  { %v3035_v46 = vpop.eup %3034 }
 0x6e8   :  { %596 = vrot.lane.b32.xlu1 %v3035_v46, %s3267_s19  ;;  %v582_v48 = vmul.f32 0.5, %v3035_v46  ;;  %v585_v49 = vadd.f32 0.5, %v583_v47 }
 0x6ea   :  { %v584_v52 = vadd.f32 0.5, %v582_v48  ;;  %v593_v60 = vmul.f32 %v589_v56, %v585_v49 }
 0x6ec   :  { %v592_v63 = vmul.f32 %v588_v59, %v584_v52 }
 0x758   :  { %v599_v50 = vpop.permute.xlu0 %598 }
 0x759   :  { %v603_v51 = vmul.f32 %v599_v50, %v585_v49 }
 0x75a   :  { %v597_v53 = vpop.permute.xlu1 %596 }
 0x75b   :  { %v602_v54 = vmul.f32 %v597_v53, %v584_v52  ;;  %608 = vrot.lane.b32.xlu0 %v603_v51, %s3278_s3 }
 0x75d   :  { %606 = vrot.lane.b32.xlu1 %v602_v54, %s3278_s3 }
 0x7cd   :  { %v609_v61 = vpop.permute.xlu0 %608 }
 0x7ce   :  { %v3537_v62 = vadd.f32 %v609_v61, %v593_v60 }
 0x7cf   :  { %v607_v1 = vpop.permute.xlu1 %606 }
 0x7d0   :  { %3036 = vtanh.f32 %v3537_v62  ;;  %v3540_v3 = vadd.f32 %v607_v1, %v592_v63 }
 0x7d2   :  { %3038 = vtanh.f32 %v3540_v3 }
 0x7da   :  { %v3037_v5 = vpop.eup %3036 }
 0x7db   :  { %620 = vrot.lane.b32.xlu0 %v3037_v5, %s3267_s19 }
 0x7dc   :  { %v3039_v6 = vpop.eup %3038 }
 0x7dd   :  { %618 = vrot.lane.b32.xlu1 %v3039_v6, %s3267_s19 }
 0x84d   :  { %v621_v36 = vpop.permute.xlu0 %620 }
 0x84e   :  { %v625_v39 = vmul.f32 %v621_v36, %v585_v49 }
 0x84f   :  { %v619_v7 = vpop.permute.xlu1 %618 }
 0x850   :  { %v624_v8 = vmul.f32 %v619_v7, %v584_v52  ;;  %v627_v9 = vpack.c.bf16 %v625_v39, %v625_v39 }
 0x852   :  { %v626_v13 = vpack.c.bf16 %v624_v8, %v624_v8  ;;  %v631_v15 = vunpack.c.l.b16 %v627_v9 }
 0x854   :  { %v630_v14 = vunpack.c.l.b16 %v626_v13 }
 0x856   :  { %v632_v16 = vrot.slane %v630_v14, 1 }
 0x858   :  { %v633_v20 = vsel %vm315_vm3, %v631_v15, %v632_v16  ;;  %v870_v15 = vrot.slane %v3540_v3, 7  ;;  %v871_v16 = vrot.slane %v3537_v62, 7 }
 0x859   :  { %v634_v21 = vpack.c.b16 %v633_v20, %v633_v20 }
 0x85b   :  { %635 = vrot.lane.b32.xlu1 %v634_v21, %s3278_s3 }
 0x8cd   :  { %v636_v22 = vpop.permute.xlu1 %635 }
 0x8ce   :  { %2744 = vmatmul.mubr.msk.bf16.vlgmr.msra.gmra.mrb[8].mxu0 %vm218_vm4, %v636_v22 }
 0x8cf   :  { %2748 = vmatpush3.bf16.msra.mxu0 %v3461_v55  ;;  %2751 = vmatprep.mubr.msk.bf16.mxu0 %vm3276_vm0, %v3275_v0 }
 0x8d0   :  { %2749 = vmatprep.subr.bf16.mxu0 %v3275_v0 }
 0x8d3   :  { %2750 = vmatpush3.bf16.msra.mxu0 %v3468_v57 }
 0x8d4   :  { %2771 = vmatprep.subr.bf16.mxu0 %v3275_v0 }
 0x8da   :  { %2752 = vmatmul.mubr.msk.bf16.vlgmr.msra.gmra.mrb[8].mxu0 %vm218_vm4, %v3503_v19 }
 0x8db   :  { %2772 = vmatpush3.bf16.msra.mxu0 %v3447_v41  ;;  %2775 = vmatprep.mubr.msk.bf16.mxu0 %vm3276_vm0, %v3275_v0 }
 0x8dc   :  { %2773 = vmatprep.subr.bf16.mxu0 %v3275_v0 }
 0x8df   :  { %2774 = vmatpush3.bf16.msra.mxu0 %v3450_v42 }
 0x8e0   :  { %2779 = vmatprep.subr.bf16.mxu0 %v3275_v0 }
 0x9ad   :  { %v714_v23 = vpop.f32.mrb[8].mxu0 }
 0x9ae   :  { %v2956_v24 = vadd.f32 %v3485_v58, %v714_v23  ;;  %v2753_v27 = vpop.f32.mrb[9].mxu0 }
 0x9af   :  { %v717_v28 = vpop.f32.mrb[10].mxu0 }
 0x9b0   :  { %3040 = vtanh.f32 %v2956_v24  ;;  %v2754_v29 = vpop.f32.mrb[11].mxu0 }
 0x9ba   :  { %v3041_v30 = vpop.eup %3040 }
 0x9bb   :  { %726 = vrot.lane.b32.xlu0 %v3041_v30, %s3267_s19  ;;  %v722_v19 = vmul.f32 0.5, %v3041_v30 }
 0x9bd   :  { %v723_v31 = vadd.f32 0.5, %v722_v19 }
 0x9bf   :  { %v724_v34 = vmul.f32 %v723_v31, %v3490_v10 }
 0xa2d   :  { %v727_v32 = vpop.permute.xlu0 %726 }
 0xa2e   :  { %v729_v33 = vmul.f32 %v727_v32, %v723_v31 }
 0xa30   :  { %731 = vrot.lane.b32.xlu1 %v729_v33, %s3278_s3 }
 0xaa2   :  { %v732_v35 = vpop.permute.xlu1 %731 }
 0xaa3   :  { %v3566_v37 = vadd.f32 %v732_v35, %v724_v34 }
 0xaa5   :  { %3042 = vtanh.f32 %v3566_v37 }
 0xaaf   :  { %v3043_v38 = vpop.eup %3042 }
 0xab0   :  { %737 = vrot.lane.b32.xlu0 %v3043_v38, %s3267_s19 }
 0xb22   :  { %v738_v40 = vpop.permute.xlu0 %737 }
 0xb23   :  { %v740_v43 = vmul.f32 %v738_v40, %v723_v31 }
 0xb25   :  { %v741_v44 = vpack.c.bf16 %v740_v43, %v740_v43 }
 0xb27   :  { %743 = vrot.lane.b32.xlu1 %v741_v44, %s3278_s3 }
 0xb99   :  { %v3571_v45 = vpop.permute.xlu1 %743 }
 0xb9a   :  { %2760 = vmatmul.mubr.msk.bf16.vlgmr.msra.gmra.mrb[12].mxu1 %vm218_vm4, %v3571_v45 }
 0xb9b   :  { %2764 = vmatpush3.bf16.msra.mxu1 %v3412_v2  ;;  %2767 = vmatprep.mubr.msk.bf16.mxu1 %vm3276_vm0, %v3275_v0 }
 0xb9c   :  { %2765 = vmatprep.subr.bf16.mxu1 %v3275_v0 }
 0xb9f   :  { %2766 = vmatpush3.bf16.msra.mxu1 %v3416_v4 }
 0xba0   :  { %2787 = vmatprep.subr.bf16.mxu1 %v3275_v0 }
 0xba2   :  { %2768 = vmatmul.mubr.msk.bf16.vlgmr.msra.gmra.mrb[16].mxu1 %vm218_vm4, %v636_v22 }
 0xba3   :  { %2788 = vmatpush3.bf16.msra.mxu1 %v3493_v11  ;;  %2791 = vmatprep.mubr.msk.bf16.mxu1 %vm3276_vm0, %v3275_v0 }
 0xba4   :  { %2789 = vmatprep.subr.bf16.mxu1 %v3275_v0 }
 0xba7   :  { %2790 = vmatpush3.bf16.msra.mxu1 %v3496_v12 }
 0xba8   :  { %2795 = vmatprep.subr.bf16.mxu1 %v3275_v0 }
 0xc6d   :  { %v782_v10 = vpop.f32.mrb[12].mxu1 }
 0xc6e   :  { %v783_v46 = vadd.f32 %v3523_v25, %v782_v10  ;;  %v2761_v47 = vpop.f32.mrb[13].mxu1 }
 0xc6f   :  { %v785_v48 = vpop.f32.mrb[14].mxu1 }
 0xc70   :  { %v795_v49 = vrot.slane %v783_v46, %v3525_v26  ;;  %v2762_v50 = vpop.f32.mrb[15].mxu1 }
 0xc72   :  { %v796_v51 = vcombine.high %v795_v49, %v795_v49  ;;  %2554 = vst.sshfl [vmem:[#allocation11 + $0x1] sm:$0x1 pattern:$0x73625140] %v795_v49 }
 0xc74   :  { %2555 = vst.sshfl [vmem:[#allocation11 + $0x9] sm:$0x1 pattern:$0x73625140] %v796_v51 }
 0xc75   :  { %v849_v52 = vpop.f32.mrb[16].mxu1 }
 0xc76   :  { %v856_v53 = vrot.slane %v849_v52, 6  ;;  %v857_v54 = vrot.slane %v849_v52, 7  ;;  %v2769_v56 = vpop.f32.mrb[17].mxu1 }
 0xc77   :  { %v852_v59 = vpop.f32.mrb[18].mxu1 }
 0xc78   :  { %v860_v60 = vadd.f32 %v856_v53, %v3430_v17  ;;  %v861_v61 = vadd.f32 %v857_v54, %v3432_v18  ;;  %v2770_v63 = vpop.f32.mrb[19].mxu1 }
 0xc7a   :  { %3044 = vtanh.f32 %v860_v60 }
 0xc7b   :  { %3046 = vtanh.f32 %v861_v61 }
 0xc84   :  { %v3045_v1 = vpop.eup %3044 }
 0xc85   :  { %v3047_v5 = vpop.eup %3046  ;;  %878 = vrot.lane.b32.xlu0 %v3045_v1, %s3267_s19  ;;  %v864_v6 = vmul.f32 0.5, %v3045_v1 }
 0xc86   :  { %880 = vrot.lane.b32.xlu1 %v3047_v5, %s3267_s19  ;;  %v865_v36 = vmul.f32 0.5, %v3047_v5 }
 0xc87   :  { %v866_v39 = vadd.f32 0.5, %v864_v6 }
 0xc88   :  { %v867_v7 = vadd.f32 0.5, %v865_v36 }
 0xc89   :  { %v874_v20 = vmul.f32 %v870_v15, %v866_v39 }
 0xc8a   :  { %v875_v21 = vmul.f32 %v871_v16, %v867_v7 }
 0xcf7   :  { %v879_v8 = vpop.permute.xlu0 %878 }
 0xcf8   :  { %v881_v9 = vpop.permute.xlu1 %880  ;;  %v884_v13 = vmul.f32 %v879_v8, %v866_v39 }
 0xcf9   :  { %v885_v14 = vmul.f32 %v881_v9, %v867_v7 }
 0xcfa   :  { %888 = vrot.lane.b32.xlu0 %v884_v13, %s3278_s3 }
 0xcfb   :  { %890 = vrot.lane.b32.xlu1 %v885_v14, %s3278_s3 }
 0xd6c   :  { %v889_v22 = vpop.permute.xlu0 %888 }
 0xd6d   :  { %v891_v23 = vpop.permute.xlu1 %890  ;;  %v3598_v24 = vadd.f32 %v889_v22, %v874_v20 }
 0xd6e   :  { %v3600_v27 = vadd.f32 %v891_v23, %v875_v21 }
 0xd6f   :  { %3048 = vtanh.f32 %v3598_v24 }
 0xd70   :  { %3050 = vtanh.f32 %v3600_v27 }
 0xd79   :  { %v3049_v28 = vpop.eup %3048 }
 0xd7a   :  { %v3051_v29 = vpop.eup %3050  ;;  %900 = vrot.lane.b32.xlu0 %v3049_v28, %s3267_s19 }
 0xd7b   :  { %902 = vrot.lane.b32.xlu1 %v3051_v29, %s3267_s19 }
 0xdec   :  { %v901_v3 = vpop.permute.xlu0 %900 }
 0xded   :  { %v903_v62 = vpop.permute.xlu1 %902  ;;  %v906_v30 = vmul.f32 %v901_v3, %v866_v39 }
 0xdee   :  { %v907_v19 = vmul.f32 %v903_v62, %v867_v7 }
 0xdef   :  { %v908_v31 = vpack.c.bf16 %v906_v30, %v906_v30 }
 0xdf0   :  { %v909_v32 = vpack.c.bf16 %v907_v19, %v907_v19 }
 0xdf1   :  { %v912_v33 = vunpack.c.l.b16 %v908_v31 }
 0xdf2   :  { %v913_v34 = vunpack.c.l.b16 %v909_v32 }
 0xdf3   :  { %v914_v35 = vrot.slane %v912_v33, 2 }
 0xdf4   :  { %v915_v38 = vrot.slane %v913_v34, 1 }
 0xdf6   :  { %v916_v40 = vsel %vm315_vm3, %v915_v38, %v914_v35  ;;  %v1153_v35 = vrot.slane %v3598_v24, 7  ;;  %v1154_v38 = vrot.slane %v3600_v27, 7 }
 0xdf7   :  { %v917_v43 = vpack.c.b16 %v916_v40, %v916_v40 }
 0xdf9   :  { %918 = vrot.lane.b32.xlu0 %v917_v43, %s3278_s3 }
 0xe6b   :  { %v919_v44 = vpop.permute.xlu0 %918 }
 0xe6c   :  { %2776 = vmatmul.mubr.msk.bf16.vlgmr.msra.gmra.mrb[12].mxu0 %vm218_vm4, %v919_v44 }
 0xe6d   :  { %2780 = vmatpush3.bf16.msra.mxu0 %v3461_v55  ;;  %2783 = vmatprep.mubr.msk.bf16.mxu0 %vm3276_vm0, %v3275_v0 }
 0xe6e   :  { %2781 = vmatprep.subr.bf16.mxu0 %v3275_v0 }
 0xe71   :  { %2782 = vmatpush3.bf16.msra.mxu0 %v3468_v57 }
 0xe72   :  { %2803 = vmatprep.subr.bf16.mxu0 %v3275_v0 }
 0xe78   :  { %2784 = vmatmul.mubr.msk.bf16.vlgmr.msra.gmra.mrb[12].mxu0 %vm218_vm4, %v3571_v45 }
 0xe79   :  { %2804 = vmatpush3.bf16.msra.mxu0 %v3447_v41  ;;  %2807 = vmatprep.mubr.msk.bf16.mxu0 %vm3276_vm0, %v3275_v0 }
 0xe7a   :  { %2805 = vmatprep.subr.bf16.mxu0 %v3275_v0 }
 0xe7d   :  { %2806 = vmatpush3.bf16.msra.mxu0 %v3450_v42 }
 0xe7e   :  { %2811 = vmatprep.subr.bf16.mxu0 %v3275_v0 }
 0xf4b   :  { %v997_v10 = vpop.f32.mrb[12].mxu0 }
 0xf4c   :  { %v2957_v46 = vadd.f32 %v3485_v58, %v997_v10  ;;  %v2785_v47 = vpop.f32.mrb[13].mxu0 }
 0xf4d   :  { %v1000_v48 = vpop.f32.mrb[14].mxu0 }
 0xf4e   :  { %3052 = vtanh.f32 %v2957_v46  ;;  %v2786_v49 = vpop.f32.mrb[15].mxu0 }
 0xf58   :  { %v3053_v50 = vpop.eup %3052 }
 0xf59   :  { %1009 = vrot.lane.b32.xlu1 %v3053_v50, %s3267_s19  ;;  %v1005_v45 = vmul.f32 0.5, %v3053_v50 }
 0xf5b   :  { %v1006_v51 = vadd.f32 0.5, %v1005_v45 }
 0xf5d   :  { %v1007_v54 = vmul.f32 %v1006_v51, %v3566_v37 }
 0xfcb   :  { %v1010_v52 = vpop.permute.xlu1 %1009 }
 0xfcc   :  { %v1012_v53 = vmul.f32 %v1010_v52, %v1006_v51 }
 0xfce   :  { %1014 = vrot.lane.b32.xlu0 %v1012_v53, %s3278_s3 }
0x1040   :  { %v1015_v56 = vpop.permute.xlu0 %1014 }
0x1041   :  { %v3627_v59 = vadd.f32 %v1015_v56, %v1007_v54 }
0x1043   :  { %3054 = vtanh.f32 %v3627_v59 }
0x104d   :  { %v3055_v60 = vpop.eup %3054 }
0x104e   :  { %1020 = vrot.lane.b32.xlu1 %v3055_v60, %s3267_s19 }
0x10c0   :  { %v1021_v61 = vpop.permute.xlu1 %1020 }
0x10c1   :  { %v1023_v63 = vmul.f32 %v1021_v61, %v1006_v51 }
0x10c3   :  { %v1024_v1 = vpack.c.bf16 %v1023_v63, %v1023_v63 }
0x10c5   :  { %1026 = vrot.lane.b32.xlu0 %v1024_v1, %s3278_s3 }
0x1137   :  { %v3632_v5 = vpop.permute.xlu0 %1026 }
0x1138   :  { %2792 = vmatmul.mubr.msk.bf16.vlgmr.msra.gmra.mrb[20].mxu1 %vm218_vm4, %v3632_v5 }
0x1139   :  { %2796 = vmatpush3.bf16.msra.mxu1 %v3412_v2  ;;  %2799 = vmatprep.mubr.msk.bf16.mxu1 %vm3276_vm0, %v3275_v0 }
0x113a   :  { %2797 = vmatprep.subr.bf16.mxu1 %v3275_v0 }
0x113d   :  { %2798 = vmatpush3.bf16.msra.mxu1 %v3416_v4 }
0x113e   :  { %2819 = vmatprep.subr.bf16.mxu1 %v3275_v0 }
0x1140   :  { %2800 = vmatmul.mubr.msk.bf16.vlgmr.msra.gmra.mrb[24].mxu1 %vm218_vm4, %v919_v44 }
0x1141   :  { %2820 = vmatpush3.bf16.msra.mxu1 %v3493_v11  ;;  %2823 = vmatprep.mubr.msk.bf16.mxu1 %vm3276_vm0, %v3275_v0 }
0x1142   :  { %2821 = vmatprep.subr.bf16.mxu1 %v3275_v0 }
0x1145   :  { %2822 = vmatpush3.bf16.msra.mxu1 %v3496_v12 }
0x1146   :  { %2827 = vmatprep.subr.bf16.mxu1 %v3275_v0 }
0x120b   :  { %v1065_v37 = vpop.f32.mrb[20].mxu1 }
0x120c   :  { %v1066_v6 = vadd.f32 %v3523_v25, %v1065_v37  ;;  %v2793_v36 = vpop.f32.mrb[21].mxu1 }
0x120d   :  { %v1068_v39 = vpop.f32.mrb[22].mxu1 }
0x120e   :  { %v1078_v7 = vrot.slane %v1066_v6, %v3525_v26  ;;  %v2794_v8 = vpop.f32.mrb[23].mxu1 }
0x1210   :  { %v1079_v9 = vcombine.high %v1078_v7, %v1078_v7  ;;  %2560 = vst.sshfl [vmem:[#allocation11 + $0x2] sm:$0x1 pattern:$0x73625140] %v1078_v7 }
0x1212   :  { %2561 = vst.sshfl [vmem:[#allocation11 + $0xa] sm:$0x1 pattern:$0x73625140] %v1079_v9 }
0x1213   :  { %v1132_v13 = vpop.f32.mrb[24].mxu1 }
0x1214   :  { %v1139_v14 = vrot.slane %v1132_v13, 5  ;;  %v1140_v15 = vrot.slane %v1132_v13, 6  ;;  %v2801_v16 = vpop.f32.mrb[25].mxu1 }
0x1215   :  { %v1135_v20 = vpop.f32.mrb[26].mxu1 }
0x1216   :  { %v1143_v21 = vadd.f32 %v1139_v14, %v3430_v17  ;;  %v1144_v22 = vadd.f32 %v1140_v15, %v3432_v18  ;;  %v2802_v23 = vpop.f32.mrb[27].mxu1 }
0x1218   :  { %3056 = vtanh.f32 %v1143_v21 }
0x1219   :  { %3058 = vtanh.f32 %v1144_v22 }
0x1222   :  { %v3057_v28 = vpop.eup %3056 }
0x1223   :  { %v3059_v29 = vpop.eup %3058  ;;  %1161 = vrot.lane.b32.xlu1 %v3057_v28, %s3267_s19  ;;  %v1147_v3 = vmul.f32 0.5, %v3057_v28 }
0x1224   :  { %1163 = vrot.lane.b32.xlu0 %v3059_v29, %s3267_s19  ;;  %v1148_v62 = vmul.f32 0.5, %v3059_v29 }
0x1225   :  { %v1149_v30 = vadd.f32 0.5, %v1147_v3 }
0x1226   :  { %v1150_v19 = vadd.f32 0.5, %v1148_v62 }
0x1227   :  { %v1157_v40 = vmul.f32 %v1153_v35, %v1149_v30 }
0x1228   :  { %v1158_v43 = vmul.f32 %v1154_v38, %v1150_v19 }
0x1295   :  { %v1162_v31 = vpop.permute.xlu1 %1161 }
0x1296   :  { %v1164_v32 = vpop.permute.xlu0 %1163  ;;  %v1167_v33 = vmul.f32 %v1162_v31, %v1149_v30 }
0x1297   :  { %v1168_v34 = vmul.f32 %v1164_v32, %v1150_v19 }
0x1298   :  { %1171 = vrot.lane.b32.xlu1 %v1167_v33, %s3278_s3 }
0x1299   :  { %1173 = vrot.lane.b32.xlu0 %v1168_v34, %s3278_s3 }
0x130a   :  { %v1172_v44 = vpop.permute.xlu1 %1171 }
0x130b   :  { %v1174_v10 = vpop.permute.xlu0 %1173  ;;  %v3659_v46 = vadd.f32 %v1172_v44, %v1157_v40 }
0x130c   :  { %v3661_v47 = vadd.f32 %v1174_v10, %v1158_v43 }
0x130d   :  { %3060 = vtanh.f32 %v3659_v46 }
0x130e   :  { %3062 = vtanh.f32 %v3661_v47 }
0x1317   :  { %v3061_v48 = vpop.eup %3060 }
0x1318   :  { %v3063_v49 = vpop.eup %3062  ;;  %1183 = vrot.lane.b32.xlu1 %v3061_v48, %s3267_s19 }
0x1319   :  { %1185 = vrot.lane.b32.xlu0 %v3063_v49, %s3267_s19 }
0x138a   :  { %v1184_v24 = vpop.permute.xlu1 %1183 }
0x138b   :  { %v1186_v27 = vpop.permute.xlu0 %1185  ;;  %v1189_v50 = vmul.f32 %v1184_v24, %v1149_v30 }
0x138c   :  { %v1190_v45 = vmul.f32 %v1186_v27, %v1150_v19 }
0x138d   :  { %v1191_v51 = vpack.c.bf16 %v1189_v50, %v1189_v50 }
0x138e   :  { %v1192_v52 = vpack.c.bf16 %v1190_v45, %v1190_v45 }
0x138f   :  { %v1195_v53 = vunpack.c.l.b16 %v1191_v51 }
0x1390   :  { %v1196_v54 = vunpack.c.l.b16 %v1192_v52 }
0x1391   :  { %v1197_v56 = vrot.slane %v1195_v53, 3  ;;  %v1436_v53 = vrot.slane %v3659_v46, 7 }
0x1392   :  { %v1198_v60 = vrot.slane %v1196_v54, 2  ;;  %v1437_v54 = vrot.slane %v3661_v47, 7 }
0x1394   :  { %v1199_v61 = vsel %vm315_vm3, %v1198_v60, %v1197_v56 }
0x1395   :  { %v1200_v63 = vpack.c.b16 %v1199_v61, %v1199_v61 }
0x1397   :  { %1201 = vrot.lane.b32.xlu1 %v1200_v63, %s3278_s3 }
0x1409   :  { %v1202_v1 = vpop.permute.xlu1 %1201 }
0x140a   :  { %2808 = vmatmul.mubr.msk.bf16.vlgmr.msra.gmra.mrb[16].mxu0 %vm218_vm4, %v1202_v1 }
0x140b   :  { %2812 = vmatpush3.bf16.msra.mxu0 %v3461_v55  ;;  %2815 = vmatprep.mubr.msk.bf16.mxu0 %vm3276_vm0, %v3275_v0 }
0x140c   :  { %2813 = vmatprep.subr.bf16.mxu0 %v3275_v0 }
0x140f   :  { %2814 = vmatpush3.bf16.msra.mxu0 %v3468_v57 }
0x1410   :  { %2835 = vmatprep.subr.bf16.mxu0 %v3275_v0 }
0x1416   :  { %2816 = vmatmul.mubr.msk.bf16.vlgmr.msra.gmra.mrb[16].mxu0 %vm218_vm4, %v3632_v5 }
0x1417   :  { %2836 = vmatpush3.bf16.msra.mxu0 %v3447_v41  ;;  %2839 = vmatprep.mubr.msk.bf16.mxu0 %vm3276_vm0, %v3275_v0 }
0x1418   :  { %2837 = vmatprep.subr.bf16.mxu0 %v3275_v0 }
0x141b   :  { %2838 = vmatpush3.bf16.msra.mxu0 %v3450_v42 }
0x141c   :  { %2843 = vmatprep.subr.bf16.mxu0 %v3275_v0 }
0x14e9   :  { %v1280_v37 = vpop.f32.mrb[16].mxu0 }
0x14ea   :  { %v2958_v6 = vadd.f32 %v3485_v58, %v1280_v37  ;;  %v2817_v36 = vpop.f32.mrb[17].mxu0 }
0x14eb   :  { %v1283_v39 = vpop.f32.mrb[18].mxu0 }
0x14ec   :  { %3064 = vtanh.f32 %v2958_v6  ;;  %v2818_v7 = vpop.f32.mrb[19].mxu0 }
0x14f6   :  { %v3065_v8 = vpop.eup %3064 }
0x14f7   :  { %1292 = vrot.lane.b32.xlu0 %v3065_v8, %s3267_s19  ;;  %v1288_v5 = vmul.f32 0.5, %v3065_v8 }
0x14f9   :  { %v1289_v9 = vadd.f32 0.5, %v1288_v5 }
0x14fb   :  { %v1290_v15 = vmul.f32 %v1289_v9, %v3627_v59 }
0x1569   :  { %v1293_v13 = vpop.permute.xlu0 %1292 }
0x156a   :  { %v1295_v14 = vmul.f32 %v1293_v13, %v1289_v9 }
0x156c   :  { %1297 = vrot.lane.b32.xlu1 %v1295_v14, %s3278_s3 }
0x15de   :  { %v1298_v16 = vpop.permute.xlu1 %1297 }
0x15df   :  { %v3688_v20 = vadd.f32 %v1298_v16, %v1290_v15 }
0x15e1   :  { %3066 = vtanh.f32 %v3688_v20 }
0x15eb   :  { %v3067_v21 = vpop.eup %3066 }
0x15ec   :  { %1303 = vrot.lane.b32.xlu0 %v3067_v21, %s3267_s19 }
0x165e   :  { %v1304_v22 = vpop.permute.xlu0 %1303 }
0x165f   :  { %v1306_v23 = vmul.f32 %v1304_v22, %v1289_v9 }
0x1661   :  { %v1307_v28 = vpack.c.bf16 %v1306_v23, %v1306_v23 }
0x1663   :  { %1309 = vrot.lane.b32.xlu1 %v1307_v28, %s3278_s3 }
0x16d5   :  { %v3693_v29 = vpop.permute.xlu1 %1309 }
0x16d6   :  { %2824 = vmatmul.mubr.msk.bf16.vlgmr.msra.gmra.mrb[28].mxu1 %vm218_vm4, %v3693_v29 }
0x16d7   :  { %2828 = vmatpush3.bf16.msra.mxu1 %v3412_v2  ;;  %2831 = vmatprep.mubr.msk.bf16.mxu1 %vm3276_vm0, %v3275_v0 }
0x16d8   :  { %2829 = vmatprep.subr.bf16.mxu1 %v3275_v0 }
0x16db   :  { %2830 = vmatpush3.bf16.msra.mxu1 %v3416_v4 }
0x16dc   :  { %2851 = vmatprep.subr.bf16.mxu1 %v3275_v0 }
0x16de   :  { %2832 = vmatmul.mubr.msk.bf16.vlgmr.msra.gmra.mrb[32].mxu1 %vm218_vm4, %v1202_v1 }
0x16df   :  { %2852 = vmatpush3.bf16.msra.mxu1 %v3493_v11  ;;  %2855 = vmatprep.mubr.msk.bf16.mxu1 %vm3276_vm0, %v3275_v0 }
0x16e0   :  { %2853 = vmatprep.subr.bf16.mxu1 %v3275_v0 }
0x16e3   :  { %2854 = vmatpush3.bf16.msra.mxu1 %v3496_v12 }
0x16e4   :  { %2859 = vmatprep.subr.bf16.mxu1 %v3275_v0 }
0x17a9   :  { %v1348_v2 = vpop.f32.mrb[28].mxu1 }
0x17aa   :  { %v1349_v59 = vadd.f32 %v3523_v25, %v1348_v2  ;;  %v2825_v3 = vpop.f32.mrb[29].mxu1 }
0x17ab   :  { %v1351_v4 = vpop.f32.mrb[30].mxu1 }
0x17ac   :  { %v1361_v62 = vrot.slane %v1349_v59, %v3525_v26  ;;  %v2826_v30 = vpop.f32.mrb[31].mxu1 }
0x17ae   :  { %v1362_v19 = vcombine.high %v1361_v62, %v1361_v62  ;;  %2566 = vst.sshfl [vmem:[#allocation11 + $0x3] sm:$0x1 pattern:$0x73625140] %v1361_v62 }
0x17b0   :  { %2567 = vst.sshfl [vmem:[#allocation11 + $0xb] sm:$0x1 pattern:$0x73625140] %v1362_v19 }
0x17b1   :  { %v1415_v31 = vpop.f32.mrb[32].mxu1 }
0x17b2   :  { %v1422_v32 = vrot.slane %v1415_v31, 4  ;;  %v1423_v33 = vrot.slane %v1415_v31, 5  ;;  %v2833_v34 = vpop.f32.mrb[33].mxu1 }
0x17b3   :  { %v1418_v35 = vpop.f32.mrb[34].mxu1  ;;  %v3758_v34 = vld [vmem:[#allocation7] sm:$0xff]  }
0x17b4   :  { %v1426_v38 = vadd.f32 %v1422_v32, %v3430_v17  ;;  %v1427_v40 = vadd.f32 %v1423_v33, %v3432_v18  ;;  %v2834_v43 = vpop.f32.mrb[35].mxu1 }
0x17b6   :  { %3068 = vtanh.f32 %v1426_v38 }
0x17b7   :  { %3070 = vtanh.f32 %v1427_v40 }
0x17c0   :  { %v3069_v44 = vpop.eup %3068 }
0x17c1   :  { %v3071_v10 = vpop.eup %3070  ;;  %1444 = vrot.lane.b32.xlu0 %v3069_v44, %s3267_s19  ;;  %v1430_v48 = vmul.f32 0.5, %v3069_v44 }
0x17c2   :  { %1446 = vrot.lane.b32.xlu1 %v3071_v10, %s3267_s19  ;;  %v1431_v49 = vmul.f32 0.5, %v3071_v10 }
0x17c3   :  { %v1432_v24 = vadd.f32 0.5, %v1430_v48 }
0x17c4   :  { %v1433_v27 = vadd.f32 0.5, %v1431_v49 }
0x17c5   :  { %v1440_v56 = vmul.f32 %v1436_v53, %v1432_v24 }
0x17c6   :  { %v1441_v60 = vmul.f32 %v1437_v54, %v1433_v27 }
0x1833   :  { %v1445_v50 = vpop.permute.xlu0 %1444 }
0x1834   :  { %v1447_v45 = vpop.permute.xlu1 %1446  ;;  %v1450_v51 = vmul.f32 %v1445_v50, %v1432_v24 }
0x1835   :  { %v1451_v52 = vmul.f32 %v1447_v45, %v1433_v27 }
0x1836   :  { %1454 = vrot.lane.b32.xlu0 %v1450_v51, %s3278_s3 }
0x1837   :  { %1456 = vrot.lane.b32.xlu1 %v1451_v52, %s3278_s3 }
0x18a8   :  { %v1455_v61 = vpop.permute.xlu0 %1454 }
0x18a9   :  { %v1457_v63 = vpop.permute.xlu1 %1456  ;;  %v3720_v1 = vadd.f32 %v1455_v61, %v1440_v56 }
0x18aa   :  { %v3722_v37 = vadd.f32 %v1457_v63, %v1441_v60 }
0x18ab   :  { %3072 = vtanh.f32 %v3720_v1 }
0x18ac   :  { %3074 = vtanh.f32 %v3722_v37 }
0x18b5   :  { %v3073_v6 = vpop.eup %3072 }
0x18b6   :  { %v3075_v36 = vpop.eup %3074  ;;  %1466 = vrot.lane.b32.xlu0 %v3073_v6, %s3267_s19 }
0x18b7   :  { %1468 = vrot.lane.b32.xlu1 %v3075_v36, %s3267_s19 }
0x1928   :  { %v1467_v46 = vpop.permute.xlu0 %1466 }
0x1929   :  { %v1469_v47 = vpop.permute.xlu1 %1468  ;;  %v1472_v39 = vmul.f32 %v1467_v46, %v1432_v24  ;;  %v1719_v46 = vrot.slane %v3720_v1, 7 }
0x192a   :  { %v1473_v7 = vmul.f32 %v1469_v47, %v1433_v27  ;;  %v1720_v47 = vrot.slane %v3722_v37, 7 }
0x192b   :  { %v1474_v8 = vpack.c.bf16 %v1472_v39, %v1472_v39 }
0x192c   :  { %v1475_v5 = vpack.c.bf16 %v1473_v7, %v1473_v7 }
0x192d   :  { %v1478_v9 = vunpack.c.l.b16 %v1474_v8 }
0x192e   :  { %v1479_v13 = vunpack.c.l.b16 %v1475_v5 }
0x192f   :  { %v1480_v14 = vrot.slane %v1478_v9, 4 }
0x1930   :  { %v1481_v15 = vrot.slane %v1479_v13, 3 }
0x1932   :  { %v1482_v16 = vsel %vm315_vm3, %v1481_v15, %v1480_v14 }
0x1933   :  { %v1483_v21 = vpack.c.b16 %v1482_v16, %v1482_v16 }
0x1935   :  { %1484 = vrot.lane.b32.xlu0 %v1483_v21, %s3278_s3 }
0x19a7   :  { %v1485_v22 = vpop.permute.xlu0 %1484 }
0x19a8   :  { %2840 = vmatmul.mubr.msk.bf16.vlgmr.msra.gmra.mrb[20].mxu0 %vm218_vm4, %v1485_v22 }
0x19a9   :  { %2844 = vmatpush3.bf16.msra.mxu0 %v3461_v55  ;;  %2847 = vmatprep.mubr.msk.bf16.mxu0 %vm3276_vm0, %v3275_v0 }
0x19aa   :  { %2845 = vmatprep.subr.bf16.mxu0 %v3275_v0 }
0x19ad   :  { %2846 = vmatpush3.bf16.msra.mxu0 %v3468_v57 }
0x19ae   :  { %2867 = vmatprep.subr.bf16.mxu0 %v3275_v0 }
0x19b4   :  { %2848 = vmatmul.mubr.msk.bf16.vlgmr.msra.gmra.mrb[20].mxu0 %vm218_vm4, %v3693_v29 }
0x19b5   :  { %2868 = vmatpush3.bf16.msra.mxu0 %v3447_v41  ;;  %2871 = vmatprep.mubr.msk.bf16.mxu0 %vm3276_vm0, %v3275_v0 }
0x19b6   :  { %2869 = vmatprep.subr.bf16.mxu0 %v3275_v0 }
0x19b9   :  { %2870 = vmatpush3.bf16.msra.mxu0 %v3450_v42 }
0x19ba   :  { %2875 = vmatprep.subr.bf16.mxu0 %v3275_v0 }
0x1a87   :  { %v1563_v55 = vpop.f32.mrb[20].mxu0 }
0x1a88   :  { %v2959_v23 = vadd.f32 %v3485_v58, %v1563_v55  ;;  %v2849_v57 = vpop.f32.mrb[21].mxu0 }
0x1a89   :  { %v1566_v28 = vpop.f32.mrb[22].mxu0 }
0x1a8a   :  { %3076 = vtanh.f32 %v2959_v23  ;;  %v2850_v2 = vpop.f32.mrb[23].mxu0 }
0x1a94   :  { %v3077_v59 = vpop.eup %3076 }
0x1a95   :  { %1575 = vrot.lane.b32.xlu1 %v3077_v59, %s3267_s19  ;;  %v1571_v41 = vmul.f32 0.5, %v3077_v59 }
0x1a97   :  { %v1572_v29 = vadd.f32 0.5, %v1571_v41 }
0x1a99   :  { %v1573_v42 = vmul.f32 %v1572_v29, %v3688_v20  ;;  %v3764_v20 = vld [vmem:[#allocation7 + $0x8] sm:$0xff]  }
0x1b07   :  { %v1576_v3 = vpop.permute.xlu1 %1575 }
0x1b08   :  { %v1578_v4 = vmul.f32 %v1576_v3, %v1572_v29  ;;  %v3799_v3 = vld [vmem:[%s3975_s5] sm:$0xff]  }
0x1b0a   :  { %1580 = vrot.lane.b32.xlu0 %v1578_v4, %s3278_s3  ;;  %v3808_v4 = vld [vmem:[%s3975_s5 + $0x8] sm:$0xff]  }
0x1b7c   :  { %v1581_v62 = vpop.permute.xlu0 %1580 }
0x1b7d   :  { %v3749_v30 = vadd.f32 %v1581_v62, %v1573_v42  ;;  %v3814_v42 = vld [vmem:[#allocation8] sm:$0xff]   ;;  %v3820_v62 = vld [vmem:[#allocation8 + $0x8] sm:$0xff]  }
0x1b7f   :  { %3078 = vtanh.f32 %v3749_v30 }
0x1b89   :  { %v3079_v58 = vpop.eup %3078 }
0x1b8a   :  { %1586 = vrot.lane.b32.xlu1 %v3079_v58, %s3267_s19 }
0x1bfc   :  { %v1587_v19 = vpop.permute.xlu1 %1586 }
0x1bfd   :  { %v1589_v31 = vmul.f32 %v1587_v19, %v1572_v29  ;;  %v3827_v19 = vld [vmem:[%s3976_s6] ss:$0 sm:$0xff] }
0x1bff   :  { %v1590_v32 = vpack.c.bf16 %v1589_v31, %v1589_v31 }
0x1c01   :  { %1592 = vrot.lane.b32.xlu0 %v1590_v32, %s3278_s3 }
0x1c73   :  { %v3754_v33 = vpop.permute.xlu0 %1592 }
0x1c74   :  { %2856 = vmatmul.mubr.msk.bf16.vlgmr.msra.gmra.mrb[36].mxu1 %vm218_vm4, %v3754_v33 }
0x1c75   :  { %2860 = vmatpush3.bf16.msra.mxu1 %v3758_v34  ;;  %2863 = vmatprep.mubr.msk.bf16.mxu1 %vm3276_vm0, %v3275_v0 }
0x1c76   :  { %2861 = vmatprep.subr.bf16.mxu1 %v3275_v0 }
0x1c79   :  { %2862 = vmatpush3.bf16.msra.mxu1 %v3764_v20 }
0x1c7a   :  { %2883 = vmatprep.subr.bf16.mxu1 %v3275_v0 }
0x1c7c   :  { %2864 = vmatmul.mubr.msk.bf16.vlgmr.msra.gmra.mrb[40].mxu1 %vm218_vm4, %v1485_v22 }
0x1c7d   :  { %2884 = vmatpush3.bf16.msra.mxu1 %v3493_v11  ;;  %2887 = vmatprep.mubr.msk.bf16.mxu1 %vm3276_vm0, %v3275_v0 }
0x1c7e   :  { %2885 = vmatprep.subr.bf16.mxu1 %v3275_v0 }
0x1c81   :  { %2886 = vmatpush3.bf16.msra.mxu1 %v3496_v12 }
0x1c82   :  { %2891 = vmatprep.subr.bf16.mxu1 %v3275_v0 }
0x1d47   :  { %v1631_v35 = vpop.f32.mrb[36].mxu1 }
0x1d48   :  { %v1632_v38 = vadd.f32 %v3523_v25, %v1631_v35  ;;  %v2857_v40 = vpop.f32.mrb[37].mxu1 }
0x1d49   :  { %v1634_v43 = vpop.f32.mrb[38].mxu1 }
0x1d4a   :  { %v1644_v44 = vrot.slane %v1632_v38, %v3525_v26  ;;  %v2858_v10 = vpop.f32.mrb[39].mxu1 }
0x1d4c   :  { %v1645_v48 = vcombine.high %v1644_v44, %v1644_v44  ;;  %2572 = vst.sshfl [vmem:[#allocation11 + $0x4] sm:$0x1 pattern:$0x73625140] %v1644_v44 }
0x1d4e   :  { %2573 = vst.sshfl [vmem:[#allocation11 + $0xc] sm:$0x1 pattern:$0x73625140] %v1645_v48 }
0x1d4f   :  { %v1698_v11 = vpop.f32.mrb[40].mxu1 }
0x1d50   :  { %v1705_v49 = vrot.slane %v1698_v11, 3  ;;  %v1706_v24 = vrot.slane %v1698_v11, 4  ;;  %v2865_v27 = vpop.f32.mrb[41].mxu1 }
0x1d51   :  { %v1701_v50 = vpop.f32.mrb[42].mxu1 }
0x1d52   :  { %v1709_v12 = vadd.f32 %v1705_v49, %v3430_v17  ;;  %v1710_v45 = vadd.f32 %v1706_v24, %v3432_v18  ;;  %v2866_v51 = vpop.f32.mrb[43].mxu1 }
0x1d53   :  { %v3855_v51 = vld [vmem:[#allocation10 + $0x8] sm:$0xff]  }
0x1d54   :  { %3080 = vtanh.f32 %v1709_v12 }
0x1d55   :  { %3082 = vtanh.f32 %v1710_v45 }
0x1d5e   :  { %v3081_v25 = vpop.eup %3080 }
0x1d5f   :  { %v3083_v52 = vpop.eup %3082  ;;  %1727 = vrot.lane.b32.xlu1 %v3081_v25, %s3267_s19  ;;  %v1713_v53 = vmul.f32 0.5, %v3081_v25 }
0x1d60   :  { %1729 = vrot.lane.b32.xlu0 %v3083_v52, %s3267_s19  ;;  %v1714_v54 = vmul.f32 0.5, %v3083_v52  ;;  %v3862_v52 = vld [vmem:[%s3978_s8] ss:$0 sm:$0xff]  ;;  %s3280_s8 = smov [#allocation11]  }
0x1d61   :  { %v1715_v56 = vadd.f32 0.5, %v1713_v53  ;;  %s2518_s25 = sshll.u32 %s3280_s8, 4  ;;  %s2519_s25 = int_to_ptr.vmem [resolvable:$true] %s2518_s25 }
0x1d62   :  { %v1716_v60 = vadd.f32 0.5, %v1714_v54  ;;  %p3241_p13 = scmp.lt.s32.totalorder %s2519_s25, %s2519_s25 }
0x1d63   :  { %v1723_v39 = vmul.f32 %v1719_v46, %v1715_v56 }
0x1d64   :  { %v1724_v7 = vmul.f32 %v1720_v47, %v1716_v60 }
0x1dd1   :  { %v1728_v61 = vpop.permute.xlu1 %1727 }
0x1dd2   :  { %v1730_v63 = vpop.permute.xlu0 %1729  ;;  %v1733_v6 = vmul.f32 %v1728_v61, %v1715_v56 }
0x1dd3   :  { %v1734_v36 = vmul.f32 %v1730_v63, %v1716_v60 }
0x1dd4   :  { %1737 = vrot.lane.b32.xlu1 %v1733_v6, %s3278_s3 }
0x1dd5   :  { %1739 = vrot.lane.b32.xlu0 %v1734_v36, %s3278_s3 }
0x1e46   :  { %v1738_v8 = vpop.permute.xlu1 %1737 }
0x1e47   :  { %v1740_v5 = vpop.permute.xlu0 %1739  ;;  %v3785_v9 = vadd.f32 %v1738_v8, %v1723_v39 }
0x1e48   :  { %v3787_v13 = vadd.f32 %v1740_v5, %v1724_v7 }
0x1e49   :  { %3084 = vtanh.f32 %v3785_v9 }
0x1e4a   :  { %3086 = vtanh.f32 %v3787_v13 }
0x1e53   :  { %v3085_v14 = vpop.eup %3084 }
0x1e54   :  { %v3087_v15 = vpop.eup %3086  ;;  %1749 = vrot.lane.b32.xlu1 %v3085_v14, %s3267_s19 }
0x1e55   :  { %1751 = vrot.lane.b32.xlu0 %v3087_v15, %s3267_s19 }
0x1ec6   :  { %v1750_v1 = vpop.permute.xlu1 %1749 }
0x1ec7   :  { %v1752_v37 = vpop.permute.xlu0 %1751  ;;  %v1755_v16 = vmul.f32 %v1750_v1, %v1715_v56 }
0x1ec8   :  { %v1756_v21 = vmul.f32 %v1752_v37, %v1716_v60 }
0x1ec9   :  { %v1757_v22 = vpack.c.bf16 %v1755_v16, %v1755_v16 }
0x1eca   :  { %v1758_v55 = vpack.c.bf16 %v1756_v21, %v1756_v21 }
0x1ecb   :  { %v1761_v23 = vunpack.c.l.b16 %v1757_v22 }
0x1ecc   :  { %v1762_v57 = vunpack.c.l.b16 %v1758_v55 }
0x1ecd   :  { %v1763_v28 = vrot.slane %v1761_v23, 5 }
0x1ece   :  { %v1764_v2 = vrot.slane %v1762_v57, 4 }
0x1ed0   :  { %v1765_v59 = vsel %vm315_vm3, %v1764_v2, %v1763_v28  ;;  %v2002_v28 = vrot.slane %v3785_v9, 7  ;;  %v2003_v2 = vrot.slane %v3787_v13, 7 }
0x1ed1   :  { %v1766_v41 = vpack.c.b16 %v1765_v59, %v1765_v59 }
0x1ed3   :  { %1767 = vrot.lane.b32.xlu1 %v1766_v41, %s3278_s3 }
0x1f45   :  { %v1768_v29 = vpop.permute.xlu1 %1767 }
0x1f46   :  { %2872 = vmatmul.mubr.msk.bf16.vlgmr.msra.gmra.mrb[24].mxu0 %vm218_vm4, %v1768_v29 }
0x1f47   :  { %2876 = vmatpush3.bf16.msra.mxu0 %v3799_v3  ;;  %2879 = vmatprep.mubr.msk.bf16.mxu0 %vm3276_vm0, %v3275_v0 }
0x1f48   :  { %2877 = vmatprep.subr.bf16.mxu0 %v3275_v0 }
0x1f4b   :  { %2878 = vmatpush3.bf16.msra.mxu0 %v3808_v4 }
0x1f4c   :  { %2899 = vmatprep.subr.bf16.mxu0 %v3275_v0 }
0x1f52   :  { %2880 = vmatmul.mubr.msk.bf16.vlgmr.msra.gmra.mrb[24].mxu0 %vm218_vm4, %v3754_v33 }
0x1f53   :  { %2900 = vmatpush3.bf16.msra.mxu0 %v3814_v42  ;;  %2903 = vmatprep.mubr.msk.bf16.mxu0 %vm3276_vm0, %v3275_v0 }
0x1f54   :  { %2901 = vmatprep.subr.bf16.mxu0 %v3275_v0 }
0x1f57   :  { %2902 = vmatpush3.bf16.msra.mxu0 %v3820_v62 }
0x1f58   :  { %2907 = vmatprep.subr.bf16.mxu0 %v3275_v0 }
0x2025   :  { %v1846_v58 = vpop.f32.mrb[24].mxu0 }
0x2026   :  { %v2960_v31 = vadd.f32 %v3827_v19, %v1846_v58  ;;  %v2881_v32 = vpop.f32.mrb[25].mxu0 }
0x2027   :  { %v1849_v33 = vpop.f32.mrb[26].mxu0 }
0x2028   :  { %3088 = vtanh.f32 %v2960_v31  ;;  %v2882_v35 = vpop.f32.mrb[27].mxu0 }
0x2032   :  { %v3089_v38 = vpop.eup %3088 }
0x2033   :  { %1858 = vrot.lane.b32.xlu0 %v3089_v38, %s3267_s19  ;;  %v1854_v40 = vmul.f32 0.5, %v3089_v38 }
0x2035   :  { %v1855_v43 = vadd.f32 0.5, %v1854_v40 }
0x2037   :  { %v1856_v48 = vmul.f32 %v1855_v43, %v3749_v30  ;;  %v3849_v30 = vld [vmem:[#allocation10] sm:$0xff]  }
0x20a5   :  { %v1859_v44 = vpop.permute.xlu0 %1858 }
0x20a6   :  { %v1861_v10 = vmul.f32 %v1859_v44, %v1855_v43 }
0x20a8   :  { %1863 = vrot.lane.b32.xlu1 %v1861_v10, %s3278_s3 }
0x211a   :  { %v1864_v11 = vpop.permute.xlu1 %1863 }
0x211b   :  { %v3833_v49 = vadd.f32 %v1864_v11, %v1856_v48 }
0x211d   :  { %3090 = vtanh.f32 %v3833_v49 }
0x2127   :  { %v3091_v24 = vpop.eup %3090 }
0x2128   :  { %1869 = vrot.lane.b32.xlu0 %v3091_v24, %s3267_s19 }
0x219a   :  { %v1870_v27 = vpop.permute.xlu0 %1869 }
0x219b   :  { %v1872_v50 = vmul.f32 %v1870_v27, %v1855_v43 }
0x219d   :  { %v1873_v12 = vpack.c.bf16 %v1872_v50, %v1872_v50 }
0x219f   :  { %1875 = vrot.lane.b32.xlu1 %v1873_v12, %s3278_s3 }
0x2211   :  { %v3838_v45 = vpop.permute.xlu1 %1875 }
0x2212   :  { %2888 = vmatmul.mubr.msk.bf16.vlgmr.msra.gmra.mrb[44].mxu1 %vm218_vm4, %v3838_v45 }
0x2213   :  { %2892 = vmatpush3.bf16.msra.mxu1 %v3758_v34  ;;  %2895 = vmatprep.mubr.msk.bf16.mxu1 %vm3276_vm0, %v3275_v0 }
0x2214   :  { %2893 = vmatprep.subr.bf16.mxu1 %v3275_v0 }
0x2217   :  { %2894 = vmatpush3.bf16.msra.mxu1 %v3764_v20 }
0x2218   :  { %2915 = vmatprep.subr.bf16.mxu1 %v3275_v0 }
0x221a   :  { %2896 = vmatmul.mubr.msk.bf16.vlgmr.msra.gmra.mrb[48].mxu1 %vm218_vm4, %v1768_v29 }
0x221b   :  { %2916 = vmatpush3.bf16.msra.mxu1 %v3849_v30  ;;  %2919 = vmatprep.mubr.msk.bf16.mxu1 %vm3276_vm0, %v3275_v0 }
0x221c   :  { %2917 = vmatprep.subr.bf16.mxu1 %v3275_v0 }
0x221f   :  { %2918 = vmatpush3.bf16.msra.mxu1 %v3855_v51 }
0x2220   :  { %2923 = vmatprep.subr.bf16.mxu1 %v3275_v0 }
0x22e5   :  { %v1914_v25 = vpop.f32.mrb[44].mxu1 }
0x22e6   :  { %v1915_v53 = vadd.f32 %v3862_v52, %v1914_v25  ;;  %v2889_v54 = vpop.f32.mrb[45].mxu1 }
0x22e7   :  { %v1917_v56 = vpop.f32.mrb[46].mxu1 }
0x22e8   :  { %v1927_v60 = vrot.slane %v1915_v53, %v3525_v26  ;;  %v2890_v61 = vpop.f32.mrb[47].mxu1 }
0x22ea   :  { %v1928_v63 = vcombine.high %v1927_v60, %v1927_v60  ;;  %2578 = vst.sshfl [vmem:[#allocation11 + $0x5] sm:$0x1 pattern:$0x73625140] %v1927_v60 }
0x22ec   :  { %2579 = vst.sshfl [vmem:[#allocation11 + $0xd] sm:$0x1 pattern:$0x73625140] %v1928_v63 }
0x22ed   :  { %v1981_v6 = vpop.f32.mrb[48].mxu1 }
0x22ee   :  { %v1988_v36 = vrot.slane %v1981_v6, 2  ;;  %v1989_v46 = vrot.slane %v1981_v6, 3  ;;  %v2897_v47 = vpop.f32.mrb[49].mxu1 }
0x22ef   :  { %v1984_v39 = vpop.f32.mrb[50].mxu1 }
0x22f0   :  { %v1992_v7 = vadd.f32 %v1988_v36, %v3430_v17  ;;  %v1993_v8 = vadd.f32 %v1989_v46, %v3432_v18  ;;  %v2898_v5 = vpop.f32.mrb[51].mxu1 }
0x22f2   :  { %3092 = vtanh.f32 %v1992_v7 }
0x22f3   :  { %3094 = vtanh.f32 %v1993_v8 }
0x22fc   :  { %v3093_v14 = vpop.eup %3092 }
0x22fd   :  { %v3095_v15 = vpop.eup %3094  ;;  %2010 = vrot.lane.b32.xlu0 %v3093_v14, %s3267_s19  ;;  %v1996_v1 = vmul.f32 0.5, %v3093_v14 }
0x22fe   :  { %2012 = vrot.lane.b32.xlu1 %v3095_v15, %s3267_s19  ;;  %v1997_v37 = vmul.f32 0.5, %v3095_v15 }
0x22ff   :  { %v1998_v16 = vadd.f32 0.5, %v1996_v1 }
0x2300   :  { %v1999_v21 = vadd.f32 0.5, %v1997_v37 }
0x2301   :  { %v2006_v59 = vmul.f32 %v2002_v28, %v1998_v16 }
0x2302   :  { %v2007_v41 = vmul.f32 %v2003_v2, %v1999_v21 }
0x236f   :  { %v2011_v22 = vpop.permute.xlu0 %2010 }
0x2370   :  { %v2013_v55 = vpop.permute.xlu1 %2012  ;;  %v2016_v23 = vmul.f32 %v2011_v22, %v1998_v16 }
0x2371   :  { %v2017_v57 = vmul.f32 %v2013_v55, %v1999_v21 }
0x2372   :  { %2020 = vrot.lane.b32.xlu0 %v2016_v23, %s3278_s3 }
0x2373   :  { %2022 = vrot.lane.b32.xlu1 %v2017_v57, %s3278_s3 }
0x23e4   :  { %v2021_v29 = vpop.permute.xlu0 %2020 }
0x23e5   :  { %v2023_v58 = vpop.permute.xlu1 %2022  ;;  %v3874_v31 = vadd.f32 %v2021_v29, %v2006_v59 }
0x23e6   :  { %v3876_v32 = vadd.f32 %v2023_v58, %v2007_v41 }
0x23e7   :  { %3096 = vtanh.f32 %v3874_v31 }
0x23e8   :  { %3098 = vtanh.f32 %v3876_v32 }
0x23f1   :  { %v3097_v33 = vpop.eup %3096 }
0x23f2   :  { %v3099_v35 = vpop.eup %3098  ;;  %2032 = vrot.lane.b32.xlu0 %v3097_v33, %s3267_s19 }
0x23f3   :  { %2034 = vrot.lane.b32.xlu1 %v3099_v35, %s3267_s19 }
0x2464   :  { %v2033_v9 = vpop.permute.xlu0 %2032 }
0x2465   :  { %v2035_v13 = vpop.permute.xlu1 %2034  ;;  %v2038_v38 = vmul.f32 %v2033_v9, %v1998_v16 }
0x2466   :  { %v2039_v40 = vmul.f32 %v2035_v13, %v1999_v21 }
0x2467   :  { %v2040_v43 = vpack.c.bf16 %v2038_v38, %v2038_v38 }
0x2468   :  { %v2041_v44 = vpack.c.bf16 %v2039_v40, %v2039_v40 }
0x2469   :  { %v2044_v10 = vunpack.c.l.b16 %v2040_v43 }
0x246a   :  { %v2045_v48 = vunpack.c.l.b16 %v2041_v44 }
0x246b   :  { %v2046_v11 = vrot.slane %v2044_v10, 6 }
0x246c   :  { %v2047_v24 = vrot.slane %v2045_v48, 5 }
0x246e   :  { %v2048_v27 = vsel %vm315_vm3, %v2047_v24, %v2046_v11 }
0x246f   :  { %v2049_v50 = vpack.c.b16 %v2048_v27, %v2048_v27 }
0x2471   :  { %2050 = vrot.lane.b32.xlu0 %v2049_v50, %s3278_s3 }
0x24e3   :  { %v2051_v12 = vpop.permute.xlu0 %2050 }
0x24e4   :  { %2904 = vmatmul.mubr.msk.bf16.vlgmr.msra.gmra.mrb[28].mxu0 %vm218_vm4, %v2051_v12 }
0x24e5   :  { %2908 = vmatpush3.bf16.msra.mxu0 %v3799_v3  ;;  %2911 = vmatprep.mubr.msk.bf16.mxu0 %vm3276_vm0, %v3275_v0 }
0x24e6   :  { %2909 = vmatprep.subr.bf16.mxu0 %v3275_v0 }
0x24e9   :  { %2910 = vmatpush3.bf16.msra.mxu0 %v3808_v4 }
0x24ea   :  { %2931 = vmatprep.subr.bf16.mxu0 %v3275_v0 }
0x24f0   :  { %2912 = vmatmul.mubr.msk.bf16.vlgmr.msra.gmra.mrb[28].mxu0 %vm218_vm4, %v3838_v45 }
0x24f1   :  { %2932 = vmatpush3.bf16.msra.mxu0 %v3814_v42  ;;  %2935 = vmatprep.mubr.msk.bf16.mxu0 %vm3276_vm0, %v3275_v0 }
0x24f2   :  { %2933 = vmatprep.subr.bf16.mxu0 %v3275_v0 }
0x24f5   :  { %2934 = vmatpush3.bf16.msra.mxu0 %v3820_v62 }
0x24f6   :  { %2939 = vmatprep.subr.bf16.mxu0 %v3275_v0 }
0x25c3   :  { %v2129_v25 = vpop.f32.mrb[28].mxu0 }
0x25c4   :  { %v2961_v53 = vadd.f32 %v3827_v19, %v2129_v25  ;;  %v2913_v54 = vpop.f32.mrb[29].mxu0 }
0x25c5   :  { %v2132_v56 = vpop.f32.mrb[30].mxu0 }
0x25c6   :  { %3100 = vtanh.f32 %v2961_v53  ;;  %v2914_v60 = vpop.f32.mrb[31].mxu0 }
0x25d0   :  { %v3101_v61 = vpop.eup %3100 }
0x25d1   :  { %2141 = vrot.lane.b32.xlu1 %v3101_v61, %s3267_s19  ;;  %v2137_v42 = vmul.f32 0.5, %v3101_v61 }
0x25d3   :  { %v2138_v45 = vadd.f32 0.5, %v2137_v42 }
0x25d5   :  { %v2139_v62 = vmul.f32 %v2138_v45, %v3833_v49 }
0x2643   :  { %v2142_v63 = vpop.permute.xlu1 %2141 }
0x2644   :  { %v2144_v6 = vmul.f32 %v2142_v63, %v2138_v45 }
0x2646   :  { %2146 = vrot.lane.b32.xlu0 %v2144_v6, %s3278_s3 }
0x26b8   :  { %v2147_v36 = vpop.permute.xlu0 %2146 }
0x26b9   :  { %v3903_v46 = vadd.f32 %v2147_v36, %v2139_v62 }
0x26bb   :  { %3102 = vtanh.f32 %v3903_v46 }
0x26c5   :  { %v3103_v47 = vpop.eup %3102 }
0x26c6   :  { %2152 = vrot.lane.b32.xlu1 %v3103_v47, %s3267_s19 }
0x2738   :  { %v2153_v39 = vpop.permute.xlu1 %2152 }
0x2739   :  { %v2155_v7 = vmul.f32 %v2153_v39, %v2138_v45 }
0x273b   :  { %v2156_v8 = vpack.c.bf16 %v2155_v7, %v2155_v7 }
0x273d   :  { %2158 = vrot.lane.b32.xlu0 %v2156_v8, %s3278_s3 }
0x27af   :  { %v3908_v5 = vpop.permute.xlu0 %2158 }
0x27b0   :  { %2920 = vmatmul.mubr.msk.bf16.vlgmr.msra.gmra.mrb[52].mxu1 %vm218_vm4, %v3908_v5 }
0x27b1   :  { %2924 = vmatpush3.bf16.msra.mxu1 %v3758_v34  ;;  %2927 = vmatprep.mubr.msk.bf16.mxu1 %vm3276_vm0, %v3275_v0 }
0x27b2   :  { %2925 = vmatprep.subr.bf16.mxu1 %v3275_v0 }
0x27b5   :  { %2926 = vmatpush3.bf16.msra.mxu1 %v3764_v20 }
0x27b6   :  { %2947 = vmatprep.subr.bf16.mxu1 %v3275_v0 }
0x27b8   :  { %2928 = vmatmul.mubr.msk.bf16.vlgmr.msra.gmra.mrb[56].mxu1 %vm218_vm4, %v2051_v12 }
0x27b9   :  { %2948 = vmatpush3.bf16.msra.mxu1 %v3849_v30  ;;  %2951 = vmatprep.mubr.msk.bf16.mxu1 %vm3276_vm0, %v3275_v0 }
0x27ba   :  { %2949 = vmatprep.subr.bf16.mxu1 %v3275_v0 }
0x27bd   :  { %2950 = vmatpush3.bf16.msra.mxu1 %v3855_v51 }
0x2883   :  { %v2197_v34 = vpop.f32.mrb[52].mxu1 }
0x2884   :  { %v2198_v49 = vadd.f32 %v3862_v52, %v2197_v34  ;;  %v2921_v14 = vpop.f32.mrb[53].mxu1 }
0x2885   :  { %v2200_v15 = vpop.f32.mrb[54].mxu1 }
0x2886   :  { %v2210_v20 = vrot.slane %v2198_v49, %v3525_v26  ;;  %v2922_v1 = vpop.f32.mrb[55].mxu1 }
0x2888   :  { %v2211_v37 = vcombine.high %v2210_v20, %v2210_v20  ;;  %2584 = vst.sshfl [vmem:[#allocation11 + $0x6] sm:$0x1 pattern:$0x73625140] %v2210_v20 }
0x288a   :  { %2585 = vst.sshfl [vmem:[#allocation11 + $0xe] sm:$0x1 pattern:$0x73625140] %v2211_v37 }
0x288b   :  { %v2264_v16 = vpop.f32.mrb[56].mxu1 }
0x288c   :  { %v2271_v30 = vrot.slane %v2264_v16, 1  ;;  %v2272_v21 = vrot.slane %v2264_v16, 2  ;;  %v2929_v22 = vpop.f32.mrb[57].mxu1 }
0x288d   :  { %v2267_v55 = vpop.f32.mrb[58].mxu1 }
0x288e   :  { %v2275_v23 = vadd.f32 %v2271_v30, %v3430_v17  ;;  %v2276_v51 = vadd.f32 %v2272_v21, %v3432_v18  ;;  %v2930_v57 = vpop.f32.mrb[59].mxu1  ;;  %v2285_v17 = vrot.slane %v3874_v31, 7  ;;  %v2286_v18 = vrot.slane %v3876_v32, 7 }
0x2890   :  { %3104 = vtanh.f32 %v2275_v23 }
0x2891   :  { %3106 = vtanh.f32 %v2276_v51 }
0x289a   :  { %v3105_v28 = vpop.eup %3104 }
0x289b   :  { %v3107_v2 = vpop.eup %3106  ;;  %2293 = vrot.lane.b32.xlu1 %v3105_v28, %s3267_s19  ;;  %v2279_v59 = vmul.f32 0.5, %v3105_v28 }
0x289c   :  { %2295 = vrot.lane.b32.xlu0 %v3107_v2, %s3267_s19  ;;  %v2280_v41 = vmul.f32 0.5, %v3107_v2 }
0x289d   :  { %v2281_v29 = vadd.f32 0.5, %v2279_v59 }
0x289e   :  { %v2282_v58 = vadd.f32 0.5, %v2280_v41 }
0x289f   :  { %v2289_v38 = vmul.f32 %v2285_v17, %v2281_v29 }
0x28a0   :  { %v2290_v40 = vmul.f32 %v2286_v18, %v2282_v58 }
0x290d   :  { %v2294_v33 = vpop.permute.xlu1 %2293 }
0x290e   :  { %v2296_v35 = vpop.permute.xlu0 %2295  ;;  %v2299_v9 = vmul.f32 %v2294_v33, %v2281_v29 }
0x290f   :  { %v2300_v13 = vmul.f32 %v2296_v35, %v2282_v58 }
0x2910   :  { %2303 = vrot.lane.b32.xlu1 %v2299_v9, %s3278_s3 }
0x2911   :  { %2305 = vrot.lane.b32.xlu0 %v2300_v13, %s3278_s3 }
0x2982   :  { %v2304_v43 = vpop.permute.xlu1 %2303 }
0x2983   :  { %v2306_v44 = vpop.permute.xlu0 %2305  ;;  %v2309_v10 = vadd.f32 %v2304_v43, %v2289_v38 }
0x2984   :  { %v2310_v48 = vadd.f32 %v2306_v44, %v2290_v40 }
0x2985   :  { %3108 = vtanh.f32 %v2309_v10 }
0x2986   :  { %3110 = vtanh.f32 %v2310_v48 }
0x298f   :  { %v3109_v11 = vpop.eup %3108 }
0x2990   :  { %v3111_v24 = vpop.eup %3110  ;;  %2315 = vrot.lane.b32.xlu1 %v3109_v11, %s3267_s19 }
0x2991   :  { %2317 = vrot.lane.b32.xlu0 %v3111_v24, %s3267_s19 }
0x2a02   :  { %v2316_v27 = vpop.permute.xlu1 %2315 }
0x2a03   :  { %v2318_v50 = vpop.permute.xlu0 %2317  ;;  %v2321_v12 = vmul.f32 %v2316_v27, %v2281_v29 }
0x2a04   :  { %v2322_v31 = vmul.f32 %v2318_v50, %v2282_v58 }
0x2a05   :  { %v2323_v25 = vpack.c.bf16 %v2321_v12, %v2321_v12 }
0x2a06   :  { %v2324_v32 = vpack.c.bf16 %v2322_v31, %v2322_v31 }
0x2a07   :  { %v2327_v53 = vunpack.c.l.b16 %v2323_v25 }
0x2a08   :  { %v2328_v54 = vunpack.c.l.b16 %v2324_v32 }
0x2a09   :  { %v2329_v56 = vrot.slane %v2327_v53, 7 }
0x2a0a   :  { %v2330_v60 = vrot.slane %v2328_v54, 6 }
0x2a0c   :  { %v2331_v61 = vsel %vm315_vm3, %v2330_v60, %v2329_v56 }
0x2a0d   :  { %v2332_v42 = vpack.c.b16 %v2331_v61, %v2331_v61 }
0x2a0f   :  { %2333 = vrot.lane.b32.xlu1 %v2332_v42, %s3278_s3 }
0x2a81   :  { %v2334_v45 = vpop.permute.xlu1 %2333 }
0x2a82   :  { %2936 = vmatmul.mubr.msk.bf16.vlgmr.msra.gmra.mrb[32].mxu0 %vm218_vm4, %v2334_v45 }
0x2a83   :  { %2940 = vmatpush3.bf16.msra.mxu0 %v3799_v3  ;;  %2943 = vmatprep.mubr.msk.bf16.mxu0 %vm3276_vm0, %v3275_v0 }
0x2a84   :  { %2941 = vmatprep.subr.bf16.mxu0 %v3275_v0 }
0x2a87   :  { %2942 = vmatpush3.bf16.msra.mxu0 %v3808_v4 }
0x2a8e   :  { %2944 = vmatmul.mubr.msk.bf16.vlgmr.msra.gmra.mrb[32].mxu0 %vm218_vm4, %v3908_v5 }
0x2b61   :  { %v2412_v63 = vpop.f32.mrb[32].mxu0 }
0x2b62   :  { %v2962_v6 = vadd.f32 %v3827_v19, %v2412_v63  ;;  %v2945_v62 = vpop.f32.mrb[33].mxu0 }
0x2b63   :  { %v2415_v36 = vpop.f32.mrb[34].mxu0 }
0x2b64   :  { %3112 = vtanh.f32 %v2962_v6  ;;  %v2946_v47 = vpop.f32.mrb[35].mxu0 }
0x2b6e   :  { %v3113_v39 = vpop.eup %3112 }
0x2b6f   :  { %2424 = vrot.lane.b32.xlu0 %v3113_v39, %s3267_s19  ;;  %v2420_v3 = vmul.f32 0.5, %v3113_v39 }
0x2b71   :  { %v2421_v7 = vadd.f32 0.5, %v2420_v3 }
0x2b73   :  { %v2422_v0 = vmul.f32 %v2421_v7, %v3903_v46 }
0x2be1   :  { %v2425_v8 = vpop.permute.xlu0 %2424 }
0x2be2   :  { %v2427_v34 = vmul.f32 %v2425_v8, %v2421_v7 }
0x2be4   :  { %2429 = vrot.lane.b32.xlu1 %v2427_v34, %s3278_s3 }
0x2c56   :  { %v2430_v4 = vpop.permute.xlu1 %2429 }
0x2c57   :  { %v2432_v5 = vadd.f32 %v2430_v4, %v2422_v0 }
0x2c59   :  { %3114 = vtanh.f32 %v2432_v5 }
0x2c63   :  { %v3115_v49 = vpop.eup %3114 }
0x2c64   :  { %2435 = vrot.lane.b32.xlu0 %v3115_v49, %s3267_s19  ;;  %s3236_s19 = scalar_lea.vmem %s2519_s25, 256 }
0x2c65   :  { %p3237_p12 = scmp.ne.s32.totalorder %s2519_s25, %s3236_s19  ;;  %p3242_p0 = scmp.lt.s32.totalorder %s3236_s19, %s3236_s19 }
0x2c67   :  { %p3243_p1 = por %p3242_p0, %p3241_p13 }
0x2c69   :  { %p3244_p2 = pnand %p3243_p1, %p3237_p12 }
0x2cd6   :  { %v2436_v19 = vpop.permute.xlu0 %2435 }
0x2cd7   :  { %v2438_v14 = vmul.f32 %v2436_v19, %v2421_v7 }
0x2cd9   :  { %v2439_v15 = vpack.c.bf16 %v2438_v14, %v2438_v14 }
0x2cdb   :  { %2441 = vrot.lane.b32.xlu1 %v2439_v15, %s3278_s3 }
0x2d4d   :  { %v2442_v20 = vpop.permute.xlu1 %2441 }
0x2d4e   :  { %2952 = vmatmul.mubr.msk.bf16.vlgmr.msra.gmra.mrb[60].mxu1 %vm218_vm4, %v2442_v20 }
0x2e21   :  { %v2480_v1 = vpop.f32.mrb[60].mxu1 }
0x2e22   :  { %v2481_v37 = vadd.f32 %v3862_v52, %v2480_v1  ;;  %v2953_v16 = vpop.f32.mrb[61].mxu1 }
0x2e23   :  { %v2483_v30 = vpop.f32.mrb[62].mxu1 }
0x2e24   :  { %v2493_v46 = vrot.slane %v2481_v37, %v3525_v26  ;;  %v2954_v21 = vpop.f32.mrb[63].mxu1 }
0x2e26   :  { %v2494_v22 = vcombine.high %v2493_v46, %v2493_v46  ;;  %2590 = vst.sshfl [vmem:[#allocation11 + $0x7] sm:$0x1 pattern:$0x73625140] %v2493_v46 }
0x2e28   :  { %2591 = vst.sshfl [vmem:[#allocation11 + $0xf] sm:$0x1 pattern:$0x73625140] %v2494_v22 }
0x2e29   :  { %3247 = shalt.err (!%p3244_p2)
}
0x2e2a   :  { %s3248_s29 = scalar_lea.hbm %s3979_s9, 256 }
0x2e2b   :  { %p3249_p3 = scmp.ne.s32.totalorder %s3979_s9, %s3248_s29  ;;  %p3252_p4 = scmp.lt.u32.totalorder %s3248_s29, %s3979_s9 }
0x2e2d   :  { %p3254_p5 = pnand %p3252_p4, %p3249_p3 }
0x2e2f   :  { %3257 = shalt.err (!%p3254_p5)
}
0x2e30   :  { %2524 = dma.vmem_to_hbm [thread:$0]  %s2519_s25, 256, %s3979_s9, [#allocation4], %s3271_s4, %s3271_s4, %s3272_s24  }
0x2e31   :  { %3264 = dma.done.wait [#allocation4], 256  }
0x2e32   :  { %3265 = vsyncadd [#allocation4], 4294967040 }
0x2e33   :  { %2528 = vsyncpa [#allocation3], 1 }
0x2e34   :  { %2529 = vsyncpa [#allocation6], 1 }
0x2e35   :  { %2530 = vsyncpa [#allocation9], 1 }
0x2e36   :  { %2531 = vsyncpa [#allocation4], 1 }

</bundles_post_ra>
